<compile_context>
chip_gen: v7x
topology: tpu7x:2x2x1
jax: 0.10.0
libtpu: 0.0.40
codegen_flags: <defaults>
</compile_context>

<pallas_src>
import math

import jax
import jax.numpy as jnp
from jax import lax
from jax.experimental import pallas as pl
from jax.experimental.pallas import tpu as pltpu

# ---- small, module-consistent configuration (scaled down from n_embd=384) --
N_EMBD = 32
N_HEAD = 4
HEAD_SIZE = N_EMBD // N_HEAD      # 8
SEQ = 8                           # T (<= block_size)
BATCH = 2
HIDDEN = 4 * N_EMBD               # 128 (already lane-dense)
LN_EPS = 1e-5                     # PyTorch LayerNorm default

# padded geometry used inside the kernel
LANES = 128
C_PAD = LANES                     # embedding padded to one full lane width
HEAD_PAD = C_PAD // N_HEAD        # 32: per-head slot in the padded channel dim


def _layernorm(x, gamma, beta):
    # x is lane-padded with exact zeros beyond N_EMBD and gamma/beta are zero
    # on the pad lanes, so full-lane sums scaled by 1/N_EMBD give the true
    # statistics and the pad lanes of the result stay exactly zero.
    # (E[x^2]-mu^2 form is fine in f32 at this scale; use two-pass for bf16.)
    inv_c = 1.0 / N_EMBD
    mu = jnp.sum(x, axis=-1, keepdims=True) * inv_c
    var = jnp.sum(x * x, axis=-1, keepdims=True) * inv_c - mu * mu
    var = jnp.maximum(var, 0.0)
    return (x - mu) * lax.rsqrt(var + LN_EPS) * gamma + beta


def block_kernel(x_ref,
                 ln1_g_ref, ln1_b_ref,
                 wqkv_ref, wproj_ref, bproj_ref,
                 ln2_g_ref, ln2_b_ref,
                 w1_ref, b1_ref, w2_ref, b2_ref,
                 o_ref):
    T, CP, H, HP = SEQ, C_PAD, N_HEAD, HEAD_PAD
    x = x_ref[...]                                              # (T, CP) f32

    # ---- ln1 + multi-head causal self-attention ----------------------------
    h = _layernorm(x, ln1_g_ref[...], ln1_b_ref[...])           # (T, CP)
    # single full-width fused QKV matmul; 1/sqrt(head_size) pre-folded into Q
    qkv = jnp.dot(h, wqkv_ref[...],
                  preferred_element_type=jnp.float32)           # (T, 3*CP)
    q = jnp.transpose(qkv[:, 0 * CP:1 * CP].reshape(T, H, HP), (1, 0, 2))  # (H,T,HP)
    k = jnp.transpose(qkv[:, 1 * CP:2 * CP].reshape(T, H, HP), (1, 0, 2))
    v = jnp.transpose(qkv[:, 2 * CP:3 * CP].reshape(T, H, HP), (1, 0, 2))

    s = jnp.einsum('hqd,hkd->hqk', q, k,
                   preferred_element_type=jnp.float32)          # (H, T, T)
    # causal additive mask generated in-kernel (no mask operand / DMA)
    rowi = lax.broadcasted_iota(jnp.int32, (T, T), 0)
    coli = lax.broadcasted_iota(jnp.int32, (T, T), 1)
    s = s + jnp.where(coli <= rowi, 0.0, -1e30)[None, :, :]
    s = s - jnp.max(s, axis=-1, keepdims=True)
    p = jnp.exp(s)
    p = p * pl.reciprocal(jnp.sum(p, axis=-1, keepdims=True), approx=True)

    o = jnp.einsum('hqk,hkd->hqd', p, v,
                   preferred_element_type=jnp.float32)          # (H, T, HP)
    o_flat = jnp.transpose(o, (1, 0, 2)).reshape(T, CP)         # (T, CP) lane-dense
    att = jnp.dot(o_flat, wproj_ref[...],
                  preferred_element_type=jnp.float32) + bproj_ref[...]
    x1 = x + att                                                # residual 1

    # ---- ln2 + feed-forward -------------------------------------------------
    h2 = _layernorm(x1, ln2_g_ref[...], ln2_b_ref[...])
    ff = jnp.dot(h2, w1_ref[...], preferred_element_type=jnp.float32) + b1_ref[...]
    ff = jnp.maximum(ff, 0.0)                                   # ReLU
    ff = jnp.dot(ff, w2_ref[...], preferred_element_type=jnp.float32) + b2_ref[...]
    o_ref[...] = x1 + ff                                        # residual 2
    # TODO(synk): dropout (p=0.2) layers are identity (eval-mode / deterministic kernel)


def _pad_to(a, shape):
    return jnp.pad(a, [(0, t - s) for s, t in zip(a.shape, shape)])


def pack_params(params):
    """One-time (init-side) packing into lane-dense, zero-padded layouts."""
    C, H, HS, HP, CP = N_EMBD, N_HEAD, HEAD_SIZE, HEAD_PAD, C_PAD

    def spread_out_heads(w, col_scale=1.0):
        # (C, C) -> (CP, CP): packed output column h*HP + d  <-  w[:, h*HS + d] * scale
        w3 = (w * col_scale).reshape(C, H, HS)
        w3 = jnp.pad(w3, ((0, CP - C), (0, 0), (0, HP - HS)))
        return w3.reshape(CP, CP)

    wq = spread_out_heads(params["wq"], 1.0 / math.sqrt(HS))    # fold 1/sqrt(hs) into Q
    wk = spread_out_heads(params["wk"])
    wv = spread_out_heads(params["wv"])
    wqkv = jnp.concatenate([wq, wk, wv], axis=1)                # (CP, 3*CP) = (128, 384)

    # proj: original row h*HS + d  ->  packed row h*HP + d (matches o_flat layout)
    wp = params["wproj"].reshape(H, HS, C)
    wp = jnp.pad(wp, ((0, 0), (0, HP - HS), (0, CP - C)))       # (H, HP, CP)
    wproj = wp.reshape(CP, CP)

    return dict(
        wqkv=wqkv,
        wproj=wproj,
        bproj=_pad_to(params["bproj"], (1, CP)),
        ln1_g=_pad_to(params["ln1_g"], (1, CP)),
        ln1_b=_pad_to(params["ln1_b"], (1, CP)),
        ln2_g=_pad_to(params["ln2_g"], (1, CP)),
        ln2_b=_pad_to(params["ln2_b"], (1, CP)),
        w1=_pad_to(params["w1"], (CP, HIDDEN)),
        b1=params["b1"],                                        # (1, 128) already dense
        w2=_pad_to(params["w2"], (HIDDEN, CP)),
        b2=_pad_to(params["b2"], (1, CP)),
    )


def block_forward(x, packed):
    B, T, C = x.shape
    assert B == BATCH and T == SEQ and C == N_EMBD
    R, CP = B * T, C_PAD

    x_p = _pad_to(x.reshape(R, C), (R, CP))                     # (16, 128)

    weights = [packed["ln1_g"], packed["ln1_b"],
               packed["wqkv"], packed["wproj"], packed["bproj"],
               packed["ln2_g"], packed["ln2_b"],
               packed["w1"], packed["b1"], packed["w2"], packed["b2"]]

    def const_spec(a):  # full block, constant index -> stays resident across steps
        return pl.BlockSpec(a.shape, lambda b: (0, 0))

    out_p = pl.pallas_call(
        block_kernel,
        out_shape=jax.ShapeDtypeStruct((R, CP), jnp.float32),
        grid_spec=pltpu.PrefetchScalarGridSpec(
            num_scalar_prefetch=0,
            grid=(B,),                                          # >=2 independent steps (v7x: 2 TCs)
            in_specs=[pl.BlockSpec((SEQ, CP), lambda b: (b, 0))]
                     + [const_spec(w) for w in weights],
            out_specs=pl.BlockSpec((SEQ, CP), lambda b: (b, 0)),
        ),
        compiler_params=pltpu.CompilerParams(dimension_semantics=("parallel",)),
    )(x_p, *weights)

    return out_p[:, :C].reshape(B, T, C)


# ---- pure-JAX reference (native, unpadded shapes) ---------------------------
def block_ref(x, p):
    def ln(z, g, b):
        mu = z.mean(-1, keepdims=True)
        var = ((z - mu) ** 2).mean(-1, keepdims=True)
        return (z - mu) / jnp.sqrt(var + LN_EPS) * g + b

    B, T, C = x.shape
    h = ln(x, p["ln1_g"], p["ln1_b"])
    k = h @ p["wk"]
    q = h @ p["wq"]
    v = h @ p["wv"]
    tril = jnp.tril(jnp.ones((T, T), dtype=bool))
    outs = []
    for hd in range(N_HEAD):
        sl = slice(hd * HEAD_SIZE, (hd + 1) * HEAD_SIZE)
        s = jnp.einsum("btd,bsd->bts", q[..., sl], k[..., sl]) / math.sqrt(HEAD_SIZE)
        s = jnp.where(tril, s, -jnp.inf)
        w = jax.nn.softmax(s, axis=-1)
        outs.append(jnp.einsum("bts,bsd->btd", w, v[..., sl]))
    att = jnp.concatenate(outs, axis=-1) @ p["wproj"] + p["bproj"]
    x1 = x + att
    h2 = ln(x1, p["ln2_g"], p["ln2_b"])
    ff = jnp.maximum(h2 @ p["w1"] + p["b1"], 0.0) @ p["w2"] + p["b2"]
    return x1 + ff


def make_params(key):
    ks = jax.random.split(key, 8)
    C, Hd = N_EMBD, HIDDEN
    s = 0.02
    return {
        "ln1_g": jnp.ones((1, C), jnp.float32),
        "ln1_b": jnp.zeros((1, C), jnp.float32),
        "wk": s * jax.random.normal(ks[0], (C, C), jnp.float32),
        "wq": s * jax.random.normal(ks[1], (C, C), jnp.float32),
        "wv": s * jax.random.normal(ks[2], (C, C), jnp.float32),
        "wproj": s * jax.random.normal(ks[3], (C, C), jnp.float32),
        "bproj": s * jax.random.normal(ks[4], (1, C), jnp.float32),
        "ln2_g": jnp.ones((1, C), jnp.float32),
        "ln2_b": jnp.zeros((1, C), jnp.float32),
        "w1": s * jax.random.normal(ks[5], (C, Hd), jnp.float32),
        "b1": jnp.zeros((1, Hd), jnp.float32),
        "w2": s * jax.random.normal(ks[6], (Hd, C), jnp.float32),
        "b2": jnp.zeros((1, C), jnp.float32),
    }


if __name__ == "__main__":
    key = jax.random.PRNGKey(0)
    kx, kp = jax.random.split(key)
    x = jax.random.normal(kx, (BATCH, SEQ, N_EMBD), jnp.float32)
    params = make_params(kp)

    packed = pack_params(params)          # one-time packing, hoisted out of forward
    packed = jax.block_until_ready(packed)

    out = block_forward(x, packed)
    out = jax.block_until_ready(out)

    ref = block_ref(x, params)
    assert out.shape == (BATCH, SEQ, N_EMBD)
    assert jnp.allclose(out, ref, atol=1e-3, rtol=1e-3), "mismatch vs pure-JAX reference"
    print("KERNEL_OK")
</pallas_src>

<mosaic_0001>
module attributes {stable_mosaic.version = 11 : i64} {
  func.func @block_kernel(%arg0: i32, %arg1: memref<8x128xf32, #tpu.memory_space<vmem>>, %arg2: memref<1x128xf32, #tpu.memory_space<vmem>>, %arg3: memref<1x128xf32, #tpu.memory_space<vmem>>, %arg4: memref<128x384xf32, #tpu.memory_space<vmem>>, %arg5: memref<128x128xf32, #tpu.memory_space<vmem>>, %arg6: memref<1x128xf32, #tpu.memory_space<vmem>>, %arg7: memref<1x128xf32, #tpu.memory_space<vmem>>, %arg8: memref<1x128xf32, #tpu.memory_space<vmem>>, %arg9: memref<128x128xf32, #tpu.memory_space<vmem>>, %arg10: memref<1x128xf32, #tpu.memory_space<vmem>>, %arg11: memref<128x128xf32, #tpu.memory_space<vmem>>, %arg12: memref<1x128xf32, #tpu.memory_space<vmem>>, %arg13: memref<8x128xf32, #tpu.memory_space<vmem>>) attributes {dimension_semantics = [#tpu.dimension_semantics<parallel>], iteration_bounds = array<i64: 2>, scalar_prefetch = 0 : i64, scratch_operands = 0 : i64, tpu.core_type = #tpu.core_type<tc>, window_params = [{transform_indices = @transform_0, window_bounds = array<i64: 8, 128>}, {pipeline_mode = #tpu.pipeline_mode<synchronous>, transform_indices = @transform_1, window_bounds = array<i64: 1, 128>}, {pipeline_mode = #tpu.pipeline_mode<synchronous>, transform_indices = @transform_2, window_bounds = array<i64: 1, 128>}, {pipeline_mode = #tpu.pipeline_mode<synchronous>, transform_indices = @transform_3, window_bounds = array<i64: 128, 384>}, {pipeline_mode = #tpu.pipeline_mode<synchronous>, transform_indices = @transform_4, window_bounds = array<i64: 128, 128>}, {pipeline_mode = #tpu.pipeline_mode<synchronous>, transform_indices = @transform_5, window_bounds = array<i64: 1, 128>}, {pipeline_mode = #tpu.pipeline_mode<synchronous>, transform_indices = @transform_6, window_bounds = array<i64: 1, 128>}, {pipeline_mode = #tpu.pipeline_mode<synchronous>, transform_indices = @transform_7, window_bounds = array<i64: 1, 128>}, {pipeline_mode = #tpu.pipeline_mode<synchronous>, transform_indices = @transform_8, window_bounds = array<i64: 128, 128>}, {pipeline_mode = #tpu.pipeline_mode<synchronous>, transform_indices = @transform_9, window_bounds = array<i64: 1, 128>}, {pipeline_mode = #tpu.pipeline_mode<synchronous>, transform_indices = @transform_10, window_bounds = array<i64: 128, 128>}, {pipeline_mode = #tpu.pipeline_mode<synchronous>, transform_indices = @transform_11, window_bounds = array<i64: 1, 128>}, {transform_indices = @transform_12, window_bounds = array<i64: 8, 128>}]} {
    %c0 = arith.constant 0 : index
    %c0_0 = arith.constant 0 : index
    %0 = vector.load %arg1[%c0, %c0_0] : memref<8x128xf32, #tpu.memory_space<vmem>>, vector<8x128xf32>
    %c0_1 = arith.constant 0 : index
    %c0_2 = arith.constant 0 : index
    %1 = vector.load %arg2[%c0_1, %c0_2] : memref<1x128xf32, #tpu.memory_space<vmem>>, vector<1x128xf32>
    %c0_3 = arith.constant 0 : index
    %c0_4 = arith.constant 0 : index
    %2 = vector.load %arg3[%c0_3, %c0_4] : memref<1x128xf32, #tpu.memory_space<vmem>>, vector<1x128xf32>
    %cst = arith.constant dense<0.000000e+00> : vector<8xf32>
    %3 = vector.multi_reduction <add>, %0, %cst [1] : vector<8x128xf32> to vector<8xf32>
    %4 = vector.shape_cast %3 : vector<8xf32> to vector<8x1xf32>
    %cst_5 = arith.constant 3.125000e-02 : f32
    %5 = vector.broadcast %cst_5 : f32 to vector<8x1xf32>
    %6 = arith.mulf %4, %5 : vector<8x1xf32>
    %7 = arith.mulf %0, %0 : vector<8x128xf32>
    %cst_6 = arith.constant dense<0.000000e+00> : vector<8xf32>
    %8 = vector.multi_reduction <add>, %7, %cst_6 [1] : vector<8x128xf32> to vector<8xf32>
    %9 = vector.shape_cast %8 : vector<8xf32> to vector<8x1xf32>
    %cst_7 = arith.constant 3.125000e-02 : f32
    %10 = vector.broadcast %cst_7 : f32 to vector<8x1xf32>
    %11 = arith.mulf %9, %10 : vector<8x1xf32>
    %12 = arith.mulf %6, %6 : vector<8x1xf32>
    %13 = arith.subf %11, %12 : vector<8x1xf32>
    %cst_8 = arith.constant 0.000000e+00 : f32
    %14 = vector.broadcast %cst_8 : f32 to vector<8x1xf32>
    %15 = arith.maximumf %13, %14 : vector<8x1xf32>
    %16 = vector.broadcast %6 : vector<8x1xf32> to vector<8x128xf32>
    %17 = arith.subf %0, %16 : vector<8x128xf32>
    %cst_9 = arith.constant 9.99999974E-6 : f32
    %18 = vector.broadcast %cst_9 : f32 to vector<8x1xf32>
    %19 = arith.addf %15, %18 : vector<8x1xf32>
    %20 = math.rsqrt %19 : vector<8x1xf32>
    %21 = vector.broadcast %20 : vector<8x1xf32> to vector<8x128xf32>
    %22 = arith.mulf %17, %21 : vector<8x128xf32>
    %23 = vector.broadcast %1 : vector<1x128xf32> to vector<8x128xf32>
    %24 = arith.mulf %22, %23 : vector<8x128xf32>
    %25 = vector.broadcast %2 : vector<1x128xf32> to vector<8x128xf32>
    %26 = arith.addf %24, %25 : vector<8x128xf32>
    %c0_10 = arith.constant 0 : index
    %c0_11 = arith.constant 0 : index
    %27 = vector.load %arg4[%c0_10, %c0_11] : memref<128x384xf32, #tpu.memory_space<vmem>>, vector<128x384xf32>
    %cst_12 = arith.constant dense<0.000000e+00> : vector<8x384xf32>
    %28 = tpu.matmul %26, %27, %cst_12 {dimension_numbers = #tpu.dot_dimension_numbers<[1], [0], [0], [1], [0, 0, 1, 1], [], []>} : vector<8x128xf32>, vector<128x384xf32>, vector<8x384xf32> -> vector<8x384xf32>
    %29 = vector.extract_strided_slice %28 {offsets = [0, 0], sizes = [8, 128], strides = [1, 1]} : vector<8x384xf32> to vector<8x128xf32>
    %30 = vector.shape_cast %29 : vector<8x128xf32> to vector<8x4x32xf32>
    %31 = tpu.transpose %30, [1, 0, 2] : vector<8x4x32xf32> -> vector<4x8x32xf32>
    %32 = vector.extract_strided_slice %28 {offsets = [0, 128], sizes = [8, 128], strides = [1, 1]} : vector<8x384xf32> to vector<8x128xf32>
    %33 = vector.shape_cast %32 : vector<8x128xf32> to vector<8x4x32xf32>
    %34 = tpu.transpose %33, [1, 0, 2] : vector<8x4x32xf32> -> vector<4x8x32xf32>
    %35 = vector.extract_strided_slice %28 {offsets = [0, 256], sizes = [8, 128], strides = [1, 1]} : vector<8x384xf32> to vector<8x128xf32>
    %36 = vector.shape_cast %35 : vector<8x128xf32> to vector<8x4x32xf32>
    %37 = tpu.transpose %36, [1, 0, 2] : vector<8x4x32xf32> -> vector<4x8x32xf32>
    "tpu.trace_start"() <{level = 10 : i32, message = "hqd,hkd->hqk"}> : () -> ()
    %cst_13 = arith.constant dense<0.000000e+00> : vector<4x8x8xf32>
    %38 = tpu.matmul %31, %34, %cst_13 {dimension_numbers = #tpu.dot_dimension_numbers<[2], [2], [1], [1], [0, 0, 0, 1, 1, 1], [0], [0]>} : vector<4x8x32xf32>, vector<4x8x32xf32>, vector<4x8x8xf32> -> vector<4x8x8xf32>
    "tpu.trace_stop"() : () -> ()
    %39 = tpu.iota {dimensions = array<i32: 0>} : vector<8x8xi32>
    %40 = tpu.iota {dimensions = array<i32: 1>} : vector<8x8xi32>
    %41 = arith.cmpi sle, %40, %39 : vector<8x8xi32>
    %cst_14 = arith.constant 0.000000e+00 : f32
    %cst_15 = arith.constant -1.000000e+30 : f32
    %42 = vector.broadcast %cst_14 : f32 to vector<8x8xf32>
    %43 = vector.broadcast %cst_15 : f32 to vector<8x8xf32>
    %44 = arith.select %41, %42, %43 : vector<8x8xi1>, vector<8x8xf32>
    %45 = vector.shape_cast %44 : vector<8x8xf32> to vector<1x8x8xf32>
    %46 = vector.broadcast %45 : vector<1x8x8xf32> to vector<4x8x8xf32>
    %47 = arith.addf %38, %46 : vector<4x8x8xf32>
    %cst_16 = arith.constant dense<0xFF800000> : vector<4x8xf32>
    %48 = vector.multi_reduction <maximumf>, %47, %cst_16 [2] : vector<4x8x8xf32> to vector<4x8xf32>
    %49 = vector.shape_cast %48 : vector<4x8xf32> to vector<4x8x1xf32>
    %50 = vector.broadcast %49 : vector<4x8x1xf32> to vector<4x8x8xf32>
    %51 = arith.subf %47, %50 : vector<4x8x8xf32>
    %52 = math.exp %51 : vector<4x8x8xf32>
    %cst_17 = arith.constant dense<0.000000e+00> : vector<4x8xf32>
    %53 = vector.multi_reduction <add>, %52, %cst_17 [2] : vector<4x8x8xf32> to vector<4x8xf32>
    %54 = vector.shape_cast %53 : vector<4x8xf32> to vector<4x8x1xf32>
    %55 = tpu.reciprocal %54 {approx = true} : vector<4x8x1xf32> -> vector<4x8x1xf32>
    %56 = vector.broadcast %55 : vector<4x8x1xf32> to vector<4x8x8xf32>
    %57 = arith.mulf %52, %56 : vector<4x8x8xf32>
    "tpu.trace_start"() <{level = 10 : i32, message = "hqk,hkd->hqd"}> : () -> ()
    %cst_18 = arith.constant dense<0.000000e+00> : vector<4x8x32xf32>
    %58 = tpu.matmul %57, %37, %cst_18 {dimension_numbers = #tpu.dot_dimension_numbers<[2], [1], [1], [2], [0, 0, 0, 1, 1, 2], [0], [0]>} : vector<4x8x8xf32>, vector<4x8x32xf32>, vector<4x8x32xf32> -> vector<4x8x32xf32>
    "tpu.trace_stop"() : () -> ()
    %59 = tpu.transpose %58, [1, 0, 2] : vector<4x8x32xf32> -> vector<8x4x32xf32>
    %60 = vector.shape_cast %59 : vector<8x4x32xf32> to vector<8x128xf32>
    %c0_19 = arith.constant 0 : index
    %c0_20 = arith.constant 0 : index
    %61 = vector.load %arg5[%c0_19, %c0_20] : memref<128x128xf32, #tpu.memory_space<vmem>>, vector<128x128xf32>
    %cst_21 = arith.constant dense<0.000000e+00> : vector<8x128xf32>
    %62 = tpu.matmul %60, %61, %cst_21 {dimension_numbers = #tpu.dot_dimension_numbers<[1], [0], [0], [1], [0, 0, 1, 1], [], []>} : vector<8x128xf32>, vector<128x128xf32>, vector<8x128xf32> -> vector<8x128xf32>
    %c0_22 = arith.constant 0 : index
    %c0_23 = arith.constant 0 : index
    %63 = vector.load %arg6[%c0_22, %c0_23] : memref<1x128xf32, #tpu.memory_space<vmem>>, vector<1x128xf32>
    %64 = vector.broadcast %63 : vector<1x128xf32> to vector<8x128xf32>
    %65 = arith.addf %62, %64 : vector<8x128xf32>
    %66 = arith.addf %0, %65 : vector<8x128xf32>
    %c0_24 = arith.constant 0 : index
    %c0_25 = arith.constant 0 : index
    %67 = vector.load %arg7[%c0_24, %c0_25] : memref<1x128xf32, #tpu.memory_space<vmem>>, vector<1x128xf32>
    %c0_26 = arith.constant 0 : index
    %c0_27 = arith.constant 0 : index
    %68 = vector.load %arg8[%c0_26, %c0_27] : memref<1x128xf32, #tpu.memory_space<vmem>>, vector<1x128xf32>
    %cst_28 = arith.constant dense<0.000000e+00> : vector<8xf32>
    %69 = vector.multi_reduction <add>, %66, %cst_28 [1] : vector<8x128xf32> to vector<8xf32>
    %70 = vector.shape_cast %69 : vector<8xf32> to vector<8x1xf32>
    %cst_29 = arith.constant 3.125000e-02 : f32
    %71 = vector.broadcast %cst_29 : f32 to vector<8x1xf32>
    %72 = arith.mulf %70, %71 : vector<8x1xf32>
    %73 = arith.mulf %66, %66 : vector<8x128xf32>
    %cst_30 = arith.constant dense<0.000000e+00> : vector<8xf32>
    %74 = vector.multi_reduction <add>, %73, %cst_30 [1] : vector<8x128xf32> to vector<8xf32>
    %75 = vector.shape_cast %74 : vector<8xf32> to vector<8x1xf32>
    %cst_31 = arith.constant 3.125000e-02 : f32
    %76 = vector.broadcast %cst_31 : f32 to vector<8x1xf32>
    %77 = arith.mulf %75, %76 : vector<8x1xf32>
    %78 = arith.mulf %72, %72 : vector<8x1xf32>
    %79 = arith.subf %77, %78 : vector<8x1xf32>
    %cst_32 = arith.constant 0.000000e+00 : f32
    %80 = vector.broadcast %cst_32 : f32 to vector<8x1xf32>
    %81 = arith.maximumf %79, %80 : vector<8x1xf32>
    %82 = vector.broadcast %72 : vector<8x1xf32> to vector<8x128xf32>
    %83 = arith.subf %66, %82 : vector<8x128xf32>
    %cst_33 = arith.constant 9.99999974E-6 : f32
    %84 = vector.broadcast %cst_33 : f32 to vector<8x1xf32>
    %85 = arith.addf %81, %84 : vector<8x1xf32>
    %86 = math.rsqrt %85 : vector<8x1xf32>
    %87 = vector.broadcast %86 : vector<8x1xf32> to vector<8x128xf32>
    %88 = arith.mulf %83, %87 : vector<8x128xf32>
    %89 = vector.broadcast %67 : vector<1x128xf32> to vector<8x128xf32>
    %90 = arith.mulf %88, %89 : vector<8x128xf32>
    %91 = vector.broadcast %68 : vector<1x128xf32> to vector<8x128xf32>
    %92 = arith.addf %90, %91 : vector<8x128xf32>
    %c0_34 = arith.constant 0 : index
    %c0_35 = arith.constant 0 : index
    %93 = vector.load %arg9[%c0_34, %c0_35] : memref<128x128xf32, #tpu.memory_space<vmem>>, vector<128x128xf32>
    %cst_36 = arith.constant dense<0.000000e+00> : vector<8x128xf32>
    %94 = tpu.matmul %92, %93, %cst_36 {dimension_numbers = #tpu.dot_dimension_numbers<[1], [0], [0], [1], [0, 0, 1, 1], [], []>} : vector<8x128xf32>, vector<128x128xf32>, vector<8x128xf32> -> vector<8x128xf32>
    %c0_37 = arith.constant 0 : index
    %c0_38 = arith.constant 0 : index
    %95 = vector.load %arg10[%c0_37, %c0_38] : memref<1x128xf32, #tpu.memory_space<vmem>>, vector<1x128xf32>
    %96 = vector.broadcast %95 : vector<1x128xf32> to vector<8x128xf32>
    %97 = arith.addf %94, %96 : vector<8x128xf32>
    %cst_39 = arith.constant 0.000000e+00 : f32
    %98 = vector.broadcast %cst_39 : f32 to vector<8x128xf32>
    %99 = arith.maximumf %97, %98 : vector<8x128xf32>
    %c0_40 = arith.constant 0 : index
    %c0_41 = arith.constant 0 : index
    %100 = vector.load %arg11[%c0_40, %c0_41] : memref<128x128xf32, #tpu.memory_space<vmem>>, vector<128x128xf32>
    %cst_42 = arith.constant dense<0.000000e+00> : vector<8x128xf32>
    %101 = tpu.matmul %99, %100, %cst_42 {dimension_numbers = #tpu.dot_dimension_numbers<[1], [0], [0], [1], [0, 0, 1, 1], [], []>} : vector<8x128xf32>, vector<128x128xf32>, vector<8x128xf32> -> vector<8x128xf32>
    %c0_43 = arith.constant 0 : index
    %c0_44 = arith.constant 0 : index
    %102 = vector.load %arg12[%c0_43, %c0_44] : memref<1x128xf32, #tpu.memory_space<vmem>>, vector<1x128xf32>
    %103 = vector.broadcast %102 : vector<1x128xf32> to vector<8x128xf32>
    %104 = arith.addf %101, %103 : vector<8x128xf32>
    %105 = arith.addf %66, %104 : vector<8x128xf32>
    %c0_45 = arith.constant 0 : index
    %c0_46 = arith.constant 0 : index
    %106 = vector.load %arg13[%c0_45, %c0_46] : memref<8x128xf32, #tpu.memory_space<vmem>>, vector<8x128xf32>
    tpu.vector_store %arg13[%c0_45, %c0_46], %105 {strides = array<i32>} : memref<8x128xf32, #tpu.memory_space<vmem>>, vector<8x128xf32>,
    return
  }
  func.func @transform_0(%arg0: i32) -> (i32, i32) {
    %c0_i32 = arith.constant 0 : i32
    %c0_i32_0 = arith.constant 0 : i32
    return %arg0, %c0_i32 : i32, i32
  }
  func.func @transform_1(%arg0: i32) -> (i32, i32) {
    %c0_i32 = arith.constant 0 : i32
    %c0_i32_0 = arith.constant 0 : i32
    %c0_i32_1 = arith.constant 0 : i32
    return %c0_i32, %c0_i32_0 : i32, i32
  }
  func.func @transform_2(%arg0: i32) -> (i32, i32) {
    %c0_i32 = arith.constant 0 : i32
    %c0_i32_0 = arith.constant 0 : i32
    %c0_i32_1 = arith.constant 0 : i32
    return %c0_i32, %c0_i32_0 : i32, i32
  }
  func.func @transform_3(%arg0: i32) -> (i32, i32) {
    %c0_i32 = arith.constant 0 : i32
    %c0_i32_0 = arith.constant 0 : i32
    %c0_i32_1 = arith.constant 0 : i32
    return %c0_i32, %c0_i32_0 : i32, i32
  }
  func.func @transform_4(%arg0: i32) -> (i32, i32) {
    %c0_i32 = arith.constant 0 : i32
    %c0_i32_0 = arith.constant 0 : i32
    %c0_i32_1 = arith.constant 0 : i32
    return %c0_i32, %c0_i32_0 : i32, i32
  }
  func.func @transform_5(%arg0: i32) -> (i32, i32) {
    %c0_i32 = arith.constant 0 : i32
    %c0_i32_0 = arith.constant 0 : i32
    %c0_i32_1 = arith.constant 0 : i32
    return %c0_i32, %c0_i32_0 : i32, i32
  }
  func.func @transform_6(%arg0: i32) -> (i32, i32) {
    %c0_i32 = arith.constant 0 : i32
    %c0_i32_0 = arith.constant 0 : i32
    %c0_i32_1 = arith.constant 0 : i32
    return %c0_i32, %c0_i32_0 : i32, i32
  }
  func.func @transform_7(%arg0: i32) -> (i32, i32) {
    %c0_i32 = arith.constant 0 : i32
    %c0_i32_0 = arith.constant 0 : i32
    %c0_i32_1 = arith.constant 0 : i32
    return %c0_i32, %c0_i32_0 : i32, i32
  }
  func.func @transform_8(%arg0: i32) -> (i32, i32) {
    %c0_i32 = arith.constant 0 : i32
    %c0_i32_0 = arith.constant 0 : i32
    %c0_i32_1 = arith.constant 0 : i32
    return %c0_i32, %c0_i32_0 : i32, i32
  }
  func.func @transform_9(%arg0: i32) -> (i32, i32) {
    %c0_i32 = arith.constant 0 : i32
    %c0_i32_0 = arith.constant 0 : i32
    %c0_i32_1 = arith.constant 0 : i32
    return %c0_i32, %c0_i32_0 : i32, i32
  }
  func.func @transform_10(%arg0: i32) -> (i32, i32) {
    %c0_i32 = arith.constant 0 : i32
    %c0_i32_0 = arith.constant 0 : i32
    %c0_i32_1 = arith.constant 0 : i32
    return %c0_i32, %c0_i32_0 : i32, i32
  }
  func.func @transform_11(%arg0: i32) -> (i32, i32) {
    %c0_i32 = arith.constant 0 : i32
    %c0_i32_0 = arith.constant 0 : i32
    %c0_i32_1 = arith.constant 0 : i32
    return %c0_i32, %c0_i32_0 : i32, i32
  }
  func.func @transform_12(%arg0: i32) -> (i32, i32) {
    %c0_i32 = arith.constant 0 : i32
    %c0_i32_0 = arith.constant 0 : i32
    return %arg0, %c0_i32 : i32, i32
  }
}

</mosaic_0001>

<bundles_post_ra>
// kernel: tpu_custom_call.1
= control target key start
LH: loop header
LB: loop body
LE: loop exit
PB: predicated region body
PF: predicated region fallthrough
CT: control target
= control target key end

     0   :  { %s3769_s0 = inlined_call_operand.hbm [shape: f32[16,128], index: 0, kind: input, shape index: {}]   ;;  %s3770_s1 = inlined_call_operand.vmem [shape: f32[1,128], index: 1, kind: input, shape index: {}]   ;;  %s3771_s2 = inlined_call_operand.vmem [shape: f32[1,128], index: 2, kind: input, shape index: {}]   ;;  %s3772_s3 = inlined_call_operand.hbm [shape: f32[128,384], index: 3, kind: input, shape index: {}]   ;;  %s3773_s4 = inlined_call_operand.hbm [shape: f32[128,128], index: 4, kind: input, shape index: {}]   ;;  %s3774_s5 = inlined_call_operand.vmem [shape: f32[1,128], index: 5, kind: input, shape index: {}]   ;;  %s3775_s6 = inlined_call_operand.vmem [shape: f32[1,128], index: 6, kind: input, shape index: {}]   ;;  %s3776_s7 = inlined_call_operand.vmem [shape: f32[1,128], index: 7, kind: input, shape index: {}]   ;;  %s3777_s8 = inlined_call_operand.hbm [shape: f32[128,128], index: 8, kind: input, shape index: {}]   ;;  %s3778_s9 = inlined_call_operand.vmem [shape: f32[1,128], index: 9, kind: input, shape index: {}]   ;;  %s3779_s10 = inlined_call_operand.hbm [shape: f32[128,128], index: 10, kind: input, shape index: {}]   ;;  %s3780_s11 = inlined_call_operand.vmem [shape: f32[1,128], index: 11, kind: input, shape index: {}]   ;;  %s3781_s12 = inlined_call_operand.hbm [shape: f32[16,128], index: 12, kind: output, shape index: {}]  }
   0x1   :  { %3786 = sst [smem:[#allocation16_spill]] %s3772_s3 }
   0x2   :  { %3787 = sst [smem:[#allocation17_spill]] %s3776_s7 }
   0x3   :  { %3788 = sst [smem:[#allocation18_spill]] %s3778_s9 }
   0x4   :  { %3789 = sst [smem:[#allocation19_spill]] %s3780_s11 }
   0x5   :  { %3790 = sst [smem:[#allocation20_spill]] %s3781_s12 }
   0x6   :  { %17 = vsyncpa [#allocation3], 0 }
   0x7   :  { %19 = vsyncpa [#allocation3 + $0x1], 0 }
   0x8   :  { %20 = vsyncpa [#allocation6], 0 }
   0x9   :  { %21 = vsyncpa [#allocation9], 0 }
   0xa   :  { %22 = vsyncpa [#allocation4], 0 }
   0xb   :  { %24 = vsyncpa [#allocation4 + $0x1], 0  ;;  %s3242_s21 = smov 0   ;;  %s3244_s22 = smov 0  }
   0xc   :  { %s3246_s23 = smov 0   ;;  %s3248_s24 = smov 0  }
   0xd LB: > { %s3158_s25 = smov [#allocation5]   ;;  %s3263_s27 = sadd.s32 4294967295, %s3156_s24   ;;  %s3156_s24 = sphi %s3248_s24, %s3816_s24   ;;  %s3152_s23 = sphi %s3246_s23, %s3815_s23   ;;  %s3148_s22 = sphi %s3244_s22, %s3814_s22   ;;  %s3144_s21 = sphi %s3242_s21, %s3813_s21  }
   0xe   : > { %s336_s26 = sshll.u32 %s3158_s25, 4  ;;  %p2382_p0 = scmp.ge.s32.totalorder %s3156_s24, 1  ;;  %s3268_s26 = int_to_ptr.vmem [resolvable:$true] %s336_s26 }
   0xf   : > { %p3783_p1 = scmp.eq.s32.totalorder %s3263_s27, 0  ;;  %p318_p2 = scmp.lt.s32.totalorder %s3156_s24, 3 }
  0x10   : > { %s3159_s30 = smov [#allocation8]   ;;  %s3160_s14 = smov [#allocation7]  }
  0x11   : > { %p3270_p3 = pnand %p2382_p0, %p318_p2  ;;  %s371_s13 = sshll.u32 %s3159_s30, 4  ;;  %s3283_s13 = int_to_ptr.vmem [resolvable:$true] %s371_s13 }
  0x12   : > { %s3285_s15 = sshll.u32 %s3160_s14, 4  ;;  %s3793_s3 = sld [smem:[#allocation16_spill]]  ;;  %s350_s15 = int_to_ptr.vmem [resolvable:$true] %s3285_s15 }
  0x13   : > { %s3791_s28 = scalar_select %p3270_p3, 1, 0 }
  0x14   : > { %p2840_p5 = pneg %p3270_p3 }
  0x16   : > { %p3279_p6 = pnand %p2840_p5, %p3783_p1 }
  0x18   : > { %s2940_s18 = scalar_lea.hbm %s3793_s3, 6144  ;;  %p3295_p8 = pneg %p3279_p6 }
  0x19   : > { %p2941_p7 = scmp.ne.s32.totalorder %s3793_s3, %s2940_s18  ;;  %p2947_p11 = scmp.lt.u32.totalorder %s2940_s18, %s3793_s3 }
  0x1b   : > { %p2943_p9 = pnand %p3295_p8, %p2941_p7 }
  0x1d   : > { %p2944_p10 = pneg %p2943_p9 }
  0x1f   : > { %p2949_p12 = pnand %p2947_p11, %p2944_p10 }
  0x21   : > { %2952 = shalt.err (!%p2949_p12)
}
  0x22   : > { %s2953_s16 = scalar_lea.vmem %s3268_s26, 6144  ;;  %p2961_p5 = scmp.lt.s32.totalorder %s3268_s26, %s3268_s26 }
  0x23   : > { %p2954_p13 = scmp.ne.s32.totalorder %s3268_s26, %s2953_s16  ;;  %p2962_p4 = scmp.lt.s32.totalorder %s2953_s16, %s2953_s16 }
  0x25   : > { %p2956_p0 = pnand %p2954_p13, %p3295_p8  ;;  %p2963_p7 = por %p2962_p4, %p2961_p5 }
  0x27   : > { %p2957_p2 = pneg %p2956_p0 }
  0x29   : > { %p2964_p9 = pnand %p2963_p7, %p2957_p2 }
  0x2b   : > { %2967 = shalt.err (!%p2964_p9)
}
  0x2c   : > { %s3161_s17 = smov 384   ;;  %s3162_s18 = smov 24  }
  0x2d   : > { %2843 = dma.hbm_to_vmem [thread:$0]  (!%p3279_p6), %s3793_s3, 6144, %s3268_s26, [#allocation6], %s3161_s17, %s3161_s17, %s3162_s18  }
  0x2e   : > { %s2968_s12 = scalar_lea.hbm %s3777_s8, 2048 }
  0x2f   : > { %p2969_p4 = scmp.ne.s32.totalorder %s3777_s8, %s2968_s12  ;;  %p2975_p12 = scmp.lt.u32.totalorder %s2968_s12, %s3777_s8 }
  0x31   : > { %p2971_p10 = pnand %p2969_p4, %p3295_p8 }
  0x33   : > { %p2972_p11 = pneg %p2971_p10 }
  0x35   : > { %p2977_p13 = pnand %p2975_p12, %p2972_p11 }
  0x37   : > { %2980 = shalt.err (!%p2977_p13)
}
  0x38   : > { %s2981_s26 = scalar_lea.vmem %s3283_s13, 2048  ;;  %p2989_p7 = scmp.lt.s32.totalorder %s3283_s13, %s3283_s13 }
  0x39   : > { %p2982_p0 = scmp.ne.s32.totalorder %s3283_s13, %s2981_s26  ;;  %p2990_p9 = scmp.lt.s32.totalorder %s2981_s26, %s2981_s26 }
  0x3b   : > { %p2984_p2 = pnand %p2982_p0, %p3295_p8  ;;  %p2991_p4 = por %p2990_p9, %p2989_p7 }
  0x3d   : > { %p2985_p5 = pneg %p2984_p2 }
  0x3f   : > { %p2992_p10 = pnand %p2991_p4, %p2985_p5 }
  0x41   : > { %2995 = shalt.err (!%p2992_p10)
}
  0x42   : > { %s3163_s9 = smov 128   ;;  %s3164_s7 = smov 8  }
  0x43   : > { %2849 = dma.hbm_to_vmem [thread:$0]  (!%p3279_p6), %s3777_s8, 2048, %s3283_s13, [#allocation9], %s3163_s9, %s3163_s9, %s3164_s7  }
  0x44   : > { %s2996_s19 = scalar_lea.hbm %s3773_s4, 2048 }
  0x45   : > { %p2997_p11 = scmp.ne.s32.totalorder %s3773_s4, %s2996_s19  ;;  %p3003_p0 = scmp.lt.u32.totalorder %s2996_s19, %s3773_s4 }
  0x47   : > { %p2999_p12 = pnand %p2997_p11, %p3295_p8 }
  0x49   : > { %p3000_p13 = pneg %p2999_p12 }
  0x4b   : > { %p3005_p2 = pnand %p3003_p0, %p3000_p13 }
  0x4d   : > { %3008 = shalt.err (!%p3005_p2)
}
  0x4e   : > { %s3009_s26 = scalar_lea.vmem %s350_s15, 2048  ;;  %p3017_p4 = scmp.lt.s32.totalorder %s350_s15, %s350_s15 }
  0x4f   : > { %p3010_p5 = scmp.ne.s32.totalorder %s350_s15, %s3009_s26  ;;  %p3018_p10 = scmp.lt.s32.totalorder %s3009_s26, %s3009_s26 }
  0x51   : > { %p3012_p7 = pnand %p3010_p5, %p3295_p8  ;;  %p3019_p1 = por %p3018_p10, %p3017_p4 }
  0x53   : > { %p3013_p9 = pneg %p3012_p7 }
  0x55   : > { %p3020_p3 = pnand %p3019_p1, %p3013_p9 }
  0x57   : > { %3023 = shalt.err (!%p3020_p3)
}
  0x58   : > { %2846 = dma.hbm_to_vmem [thread:$0]  (!%p3279_p6), %s3773_s4, 2048, %s350_s15, [#allocation6], %s3163_s9, %s3163_s9, %s3164_s7  }
  0x59   : > { %s3165_s12 = smov [#allocation10]   ;;  %s3024_s20 = scalar_lea.hbm %s3779_s10, 2048 }
  0x5a   : > { %s387_s17 = sshll.u32 %s3165_s12, 4  ;;  %p3025_p1 = scmp.ne.s32.totalorder %s3779_s10, %s3024_s20  ;;  %s388_s17 = int_to_ptr.vmem [resolvable:$true] %s387_s17 }
  0x5b   : > { %p3031_p12 = scmp.lt.u32.totalorder %s3024_s20, %s3779_s10 }
  0x5c   : > { %p3027_p3 = pnand %p3025_p1, %p3295_p8 }
  0x5e   : > { %p3028_p11 = pneg %p3027_p3 }
  0x60   : > { %p3033_p13 = pnand %p3031_p12, %p3028_p11 }
  0x62   : > { %3036 = shalt.err (!%p3033_p13)
}
  0x63   : > { %s3037_s15 = scalar_lea.vmem %s388_s17, 2048  ;;  %p3045_p7 = scmp.lt.s32.totalorder %s388_s17, %s388_s17 }
  0x64   : > { %p3038_p0 = scmp.ne.s32.totalorder %s388_s17, %s3037_s15  ;;  %p3046_p9 = scmp.lt.s32.totalorder %s3037_s15, %s3037_s15 }
  0x66   : > { %p3040_p2 = pnand %p3038_p0, %p3295_p8  ;;  %p3047_p4 = por %p3046_p9, %p3045_p7 }
  0x68   : > { %p3041_p5 = pneg %p3040_p2 }
  0x6a   : > { %p3048_p10 = pnand %p3047_p4, %p3041_p5 }
  0x6c   : > { %3051 = shalt.err (!%p3048_p10)
}
  0x6d   : > { %2852 = dma.hbm_to_vmem [thread:$0]  (!%p3279_p6), %s3779_s10, 2048, %s388_s17, [#allocation9], %s3163_s9, %s3163_s9, %s3164_s7  }
  0x6e   : > { %s2381_s29 = sadd.s32 4294967294, %s3156_s24   ;;  %s3387_s25 = sadd.s32 1, %s3156_s24  }
  0x6f   : > { %s34_s12 = ssub.s32 %s3156_s24, %s3387_s25  ;;  %s37_s18 = sadd.s32 1, %s3152_s23 }
  0x70   : > { %p35_p8 = scmp.eq.s32.totalorder %s34_s12, 0  ;;  %p44_p1 = scmp.ne.s32.totalorder %s3152_s23, %s3148_s22 }
  0x71   : > { %p45_p3 = scmp.eq.s32.totalorder %s3156_s24, 0  ;;  %p50_p11 = scmp.ne.s32.totalorder %s3148_s22, %s3144_s21 }
  0x72   : > { %s3398_s19 = scalar_select %p35_p8, %s3152_s23, %s37_s18  }
  0x73   : > { %p3400_p12 = por %p45_p3, %p44_p1  ;;  %p3796_p13 = scmp.eq.s32.totalorder %s3263_s27, 0 }
  0x74   : > { %p305_p0 = scmp.eq.s32.totalorder %s3263_s27, 1  ;;  %p311_p2 = scmp.eq.s32.totalorder %s2381_s29, 1 }
  0x75   : > { %p3406_p6 = por %p3796_p13, %p50_p11  ;;  %p2865_p5 = scmp.lt.s32.totalorder %s3156_s24, 2 }
  0x76   : > { %s404_s7 = sand.u32 1, %s3152_s23   ;;  %p3413_p7 = por %p305_p0, %p44_p1 }
  0x77   : > { %p3417_p9 = por %p311_p2, %p50_p11  ;;  %s2388_s14 = sshll.u32 %s404_s7, 3 }
  0x78   : > { %s3798_s17 = scalar_select %p3413_p7, 1, 0 }
  0x79   : > { %s3799_s30 = scalar_select %p3417_p9, 1, 0 }
  0x7a   : > { %s2389_s16 = sshll.u32 %s3156_s24, 7  ;;  %s408_s11 = scalar_lea.vmem [#allocation2], %s2388_s14 }
  0x7b   : > { %s3425_s13 = scalar_lea.hbm %s3769_s0, %s2389_s16  ;;  %s415_s29 = sshll.u32 %s408_s11, 4  ;;  %s3427_s29 = int_to_ptr.vmem [resolvable:$true] %s415_s29 }
  0x7c   : > { %p3431_p4 = pnand %p2865_p5, %p3400_p12  ;;  %s405_s18 = scalar_lea.sflag [#allocation3], %s404_s7 }
  0x7d   : > { %s3052_s3 = scalar_lea.hbm %s3425_s13, 128  ;;  %s3057_s26 = scalar_lea.hbm %s3769_s0, 256 }
  0x7e   : > { %p3053_p10 = scmp.ne.s32.totalorder %s3425_s13, %s3052_s3  ;;  %p3054_p8 = pneg %p3431_p4 }
  0x7f   : > { %p3058_p11 = scmp.lt.u32.totalorder %s3425_s13, %s3769_s0  ;;  %p3059_p12 = scmp.lt.u32.totalorder %s3057_s26, %s3052_s3 }
  0x80   : > { %p3055_p1 = pnand %p3054_p8, %p3053_p10  ;;  %p3061_p0 = scmp.lt.u32.totalorder %s3052_s3, %s3425_s13 }
  0x81   : > { %p3060_p13 = por %p3059_p12, %p3058_p11 }
  0x82   : > { %p3056_p3 = pneg %p3055_p1 }
  0x83   : > { %p3062_p2 = por %p3061_p0, %p3060_p13 }
  0x85   : > { %p3063_p5 = pnand %p3062_p2, %p3056_p3 }
  0x87   : > { %3066 = shalt.err (!%p3063_p5)
}
  0x88   : > { %s3067_s7 = scalar_lea.vmem %s3427_s29, 128  ;;  %s3166_s11 = smov [#allocation2]  }
  0x89   : > { %p3068_p10 = scmp.ne.s32.totalorder %s3427_s29, %s3067_s7  ;;  %s3072_s14 = sshll.u32 %s3166_s11, 4  ;;  %s3073_s14 = int_to_ptr.vmem [resolvable:$false] %s3072_s14 }
  0x8a   : > { %s3074_s16 = scalar_lea.vmem %s3073_s14, 256  ;;  %p3075_p7 = scmp.lt.s32.totalorder %s3427_s29, %s3073_s14 }
  0x8b   : > { %p3070_p1 = pnand %p3068_p10, %p3054_p8  ;;  %p3076_p11 = scmp.lt.s32.totalorder %s3074_s16, %s3067_s7 }
  0x8d   : > { %p3071_p9 = pneg %p3070_p1  ;;  %p3077_p12 = por %p3076_p11, %p3075_p7 }
  0x8f   : > { %p3078_p13 = pnand %p3077_p12, %p3071_p9 }
  0x91   : > { %3081 = shalt.err (!%p3078_p13)
}
  0x92   : > { %2856 = dma.hbm_to_vmem [thread:$0]  (!%p3431_p4), %s3425_s13, 128, %s3427_s29, %s405_s18  }
  0x93   : > { %p3801_p3 = scmp.ne.s32.totalorder %s3791_s28, 0 }
  0x94   : > { %s3463_s3 = sand.u32 (!%p3801_p3), 1, %s3148_s22  }
  0x95   : > { %424 = sbr.rel (%p3801_p3) target bundleno = 2464 (0x9a0), region = 68  ;;  %s2391_s26 = sshll.u32 (!%p3801_p3), %s3463_s3, 3 }
  0x96   : > { %s427_s20 = scalar_lea.sflag (!%p3801_p3), [#allocation3], %s3463_s3  ;;  %s430_s15 = scalar_lea.vmem (!%p3801_p3), [#allocation2], %s2391_s26 }
  0x9c   : > { %3127 = dma.done.wait (%p3406_p6), %s427_s20, 128  }
  0x9d   : > { %3129 = vsyncadd (%p3406_p6), %s427_s20, 4294967168  ;;  %p3802_p7 = scmp.eq.s32.totalorder %s3263_s27, 0 }
  0x9f   : > { %3131 = dma.done.wait (%p3802_p7), [#allocation6], 8192   ;;  %p3803_p9 = pmov %p3802_p7 }
  0xa0   : > { %p3804_p4 = pmov %p3802_p7 }
  0xa1   : > { %3133 = vsyncadd (%p3803_p9), [#allocation6], 4294959104 }
  0xa2   : > { %3135 = dma.done.wait (%p3804_p4), [#allocation9], 4096   ;;  %p3805_p8 = pmov %p3804_p4 }
  0xa3   : > { %v3167_v0 = vmov 0.0|0.0   ;;  %v3482_v1 = vld [vmem:[%s430_s15] sm:$0xff]  ;;  %v519_v2 = vld [vmem:[#allocation5 + $0x8] sm:$0xff]  ;;  %v522_v3 = vld [vmem:[#allocation5 + $0x20] sm:$0xff]  ;;  %v3168_v54 = vmov 0.0   ;;  %vm3169_vm0 = vmmov 0  }
  0xa4   : > { %3137 = vsyncadd (%p3805_p8), [#allocation9], 4294963200  ;;  %2724 = vmatprep.subr.bf16.mxu1 %v3167_v0  ;;  %490 = vadd.xlane.f32.xlu0 %v3482_v1  ;;  %v493_v4 = vmul.f32 %v3482_v1, %v3482_v1  ;;  %v2692_v5 = vpack.c.bf16 %v522_v3, %v519_v2  ;;  %v518_v6 = vld [vmem:[#allocation5] sm:$0xff]  ;;  %v521_v7 = vld [vmem:[#allocation5 + $0x18] sm:$0xff]  ;;  %s3170_s12 = smov 32   ;;  %s3171_s18 = smov 96  }
  0xa5   : > { %v520_v8 = vld [vmem:[#allocation5 + $0x10] sm:$0xff]  ;;  %v2694_v9 = vpack.c.bf16 %v521_v7, %v518_v6  ;;  %v523_v10 = vld [vmem:[#allocation5 + $0x28] sm:$0xff]  ;;  %v525_v12 = vld [vmem:[#allocation5 + $0x38] sm:$0xff]  ;;  %630 = vmatprep.mubr.f32.mxu0 %v3168_v54  ;;  %2544 = vmatprep.mubr.msk.f32.mxu1 %vm3169_vm0, %v3168_v54  ;;  %s3172_s7 = smov 64   ;;  %vm1151_vm2 = vcmask 261120   ;;  %vm1456_vm3 = vcmask 64512  }
  0xa6   : > { %2693 = vmatprep.subr.bf16.mxu0 %v2692_v5  ;;  %v2725_v11 = vpack.c.bf16 %v523_v10, %v520_v8  ;;  %v528_v13 = vld [vmem:[#allocation5 + $0x50] sm:$0xff]  ;;  %v527_v16 = vld [vmem:[#allocation5 + $0x48] sm:$0xff]  ;;  %v526_v17 = vld [vmem:[#allocation5 + $0x40] sm:$0xff]  ;;  %vm1942_vm4 = vcmask 523264   ;;  %vm1944_vm5 = vcmask 785408   ;;  %s3806_s9 = sld [smem:[#allocation17_spill]] }
  0xa7   : > { %2695 = vmatpush1.bf16.msra.mxu0 %v2694_v9  ;;  %v2696_v14 = vpack.c.bf16 %v528_v13, %v525_v12  ;;  %v524_v15 = vld [vmem:[#allocation5 + $0x30] sm:$0xff]  ;;  %v529_v19 = vld [vmem:[#allocation5 + $0x58] sm:$0xff]  ;;  %v531_v21 = vld [vmem:[#allocation5 + $0x68] sm:$0xff]  ;;  %s3808_s11 = sld [smem:[#allocation19_spill]]  ;;  %s2425_s14 = sshll.u32 %s3263_s27, 7 }
  0xa8   : > { %494 = vadd.xlane.f32.xlu0 %v493_v4  ;;  %2726 = vmatpush3.bf16.msra.mxu1 %v2725_v11  ;;  %v2698_v18 = vpack.c.bf16 %v527_v16, %v524_v15  ;;  %v2728_v20 = vpack.c.bf16 %v529_v19, %v526_v17  ;;  %v534_v22 = vld [vmem:[#allocation5 + $0x80] sm:$0xff]  ;;  %v533_v25 = vld [vmem:[#allocation5 + $0x78] sm:$0xff]  ;;  %v532_v26 = vld [vmem:[#allocation5 + $0x70] sm:$0xff]  ;;  %s486_s16 = scalar_lea.vmem [#allocation11], %s2391_s26  ;;  %s2260_s29 = scalar_lea.sflag [#allocation4], %s3463_s3 }
  0xa9   : > { %2727 = vmatprep.subr.bf16.mxu1 %v3167_v0  ;;  %2697 = vmatprep.subr.bf16.mxu0 %v2696_v14  ;;  %v2700_v23 = vpack.c.bf16 %v534_v22, %v531_v21  ;;  %v530_v24 = vld [vmem:[#allocation5 + $0x60] sm:$0xff]  ;;  %v535_v28 = vld [vmem:[#allocation5 + $0x88] sm:$0xff]  ;;  %v537_v30 = vld [vmem:[#allocation5 + $0x98] sm:$0xff]  ;;  %s2273_s20 = sshll.u32 %s486_s16, 4  ;;  %p3810_p0 = scmp.ne.s32.totalorder %s3798_s17, 0  ;;  %s3727_s20 = int_to_ptr.vmem [resolvable:$true] %s2273_s20 }
  0xaa   : > { %v2702_v27 = vpack.c.bf16 %v533_v25, %v530_v24  ;;  %v2731_v29 = vpack.c.bf16 %v535_v28, %v532_v26  ;;  %v540_v31 = vld [vmem:[#allocation5 + $0xb0] sm:$0xff]  ;;  %v539_v34 = vld [vmem:[#allocation5 + $0xa8] sm:$0xff]  ;;  %v538_v35 = vld [vmem:[#allocation5 + $0xa0] sm:$0xff]  ;;  %s3082_s27 = scalar_lea.vmem %s3727_s20, 128  ;;  %s3176_s26 = smov [#allocation11]  }
  0xab   : > { %2699 = vmatpush1.bf16.msra.mxu0 %v2698_v18  ;;  %v2704_v32 = vpack.c.bf16 %v540_v31, %v537_v30  ;;  %v536_v33 = vld [vmem:[#allocation5 + $0x90] sm:$0xff]  ;;  %v541_v37 = vld [vmem:[#allocation5 + $0xb8] sm:$0xff]  ;;  %v543_v39 = vld [vmem:[#allocation5 + $0xc8] sm:$0xff]  ;;  %p3083_p6 = scmp.ne.s32.totalorder %s3727_s20, %s3082_s27 }
  0xac   : > { %2729 = vmatpush3.bf16.msra.mxu1 %v2728_v20  ;;  %2701 = vmatprep.subr.bf16.mxu0 %v2700_v23  ;;  %v2706_v36 = vpack.c.bf16 %v539_v34, %v536_v33  ;;  %v2734_v38 = vpack.c.bf16 %v541_v37, %v538_v35  ;;  %v546_v40 = vld [vmem:[#allocation5 + $0xe0] sm:$0xff]  ;;  %v545_v43 = vld [vmem:[#allocation5 + $0xd8] sm:$0xff]  ;;  %v544_v44 = vld [vmem:[#allocation5 + $0xd0] sm:$0xff]  ;;  %v722_v33 = vlaneseq }
  0xad   : > { %2730 = vmatprep.subr.bf16.mxu1 %v3167_v0  ;;  %v2708_v41 = vpack.c.bf16 %v546_v40, %v543_v39  ;;  %v542_v42 = vld [vmem:[#allocation5 + $0xc0] sm:$0xff]  ;;  %v547_v46 = vld [vmem:[#allocation5 + $0xe8] sm:$0xff]  ;;  %v549_v47 = vld [vmem:[#allocation5 + $0xf8] sm:$0xff]  ;;  %p3084_p2 = pnand %p3083_p6, %p3810_p0 }
  0xae   : > { %v2710_v45 = vpack.c.bf16 %v545_v43, %v542_v42  ;;  %v552_v48 = vld [vmem:[#allocation5 + $0x110] sm:$0xff]  ;;  %v2737_v49 = vpack.c.bf16 %v547_v46, %v544_v44  ;;  %v551_v52 = vld [vmem:[#allocation5 + $0x108] sm:$0xff]  ;;  %v550_v53 = vld [vmem:[#allocation5 + $0x100] sm:$0xff]  ;;  %v3523_v34 = vshrl.u32 %v722_v33, 7  ;;  %v3525_v35 = vand.u32 127, %v722_v33 }
  0xaf   : > { %2703 = vmatpush1.bf16.msra.mxu0 %v2702_v27  ;;  %v2712_v50 = vpack.c.bf16 %v552_v48, %v549_v47  ;;  %v548_v51 = vld [vmem:[#allocation5 + $0xf0] sm:$0xff]  ;;  %v553_v56 = vld [vmem:[#allocation5 + $0x118] sm:$0xff]  ;;  %v555_v57 = vld [vmem:[#allocation5 + $0x128] sm:$0xff]  ;;  %p3085_p5 = pneg %p3084_p2 }
  0xb0   : > { %2732 = vmatpush3.bf16.msra.mxu1 %v2731_v29  ;;  %2705 = vmatprep.subr.bf16.mxu0 %v2704_v32  ;;  %v2714_v55 = vpack.c.bf16 %v551_v52, %v548_v51  ;;  %v558_v58 = vld [vmem:[#allocation5 + $0x140] sm:$0xff]  ;;  %v2740_v59 = vpack.c.bf16 %v553_v56, %v550_v53  ;;  %v557_v62 = vld [vmem:[#allocation5 + $0x138] sm:$0xff]  ;;  %v556_v63 = vld [vmem:[#allocation5 + $0x130] sm:$0xff]  ;;  %vm1149_vm1 = vcmp.le.s32.totalorder %v3525_v35, %v3523_v34 }
  0xb1   : > { %2733 = vmatprep.subr.bf16.mxu1 %v3167_v0  ;;  %v2716_v60 = vpack.c.bf16 %v558_v58, %v555_v57  ;;  %v554_v61 = vld [vmem:[#allocation5 + $0x120] sm:$0xff]  ;;  %v559_v2 = vld [vmem:[#allocation5 + $0x148] sm:$0xff]  ;;  %v561_v3 = vld [vmem:[#allocation5 + $0x158] sm:$0xff] }
  0xb2   : > { %v564_v4 = vld [vmem:[#allocation5 + $0x170] sm:$0xff]  ;;  %v2718_v5 = vpack.c.bf16 %v557_v62, %v554_v61  ;;  %v2743_v6 = vpack.c.bf16 %v559_v2, %v556_v63  ;;  %v563_v9 = vld [vmem:[#allocation5 + $0x168] sm:$0xff]  ;;  %v562_v10 = vld [vmem:[#allocation5 + $0x160] sm:$0xff] }
  0xb3   : > { %2707 = vmatpush1.bf16.msra.mxu0 %v2706_v36  ;;  %v2720_v7 = vpack.c.bf16 %v564_v4, %v561_v3  ;;  %v560_v8 = vld [vmem:[#allocation5 + $0x150] sm:$0xff]  ;;  %v565_v11 = vld [vmem:[#allocation5 + $0x178] sm:$0xff]  ;;  %v3173_v36 = vmov 1983009808  }
  0xb4   : > { %2735 = vmatpush3.bf16.msra.mxu1 %v2734_v38  ;;  %2709 = vmatprep.subr.bf16.mxu0 %v2708_v41  ;;  %v2722_v12 = vpack.c.bf16 %v563_v9, %v560_v8  ;;  %v2746_v13 = vpack.c.bf16 %v565_v11, %v562_v10  ;;  %v2397_v24 = vld [vmem:[%s3770_s1] ss:$0 sm:$0xff]  ;;  %v720_v37 = vunpack.c.l.s4 %v3173_v36  ;;  %v3174_v38 = vmov 1934713408  }
  0xb5   : > { %2736 = vmatprep.subr.bf16.mxu1 %v3167_v0  ;;  %v2398_v26 = vld [vmem:[%s3771_s2] ss:$0 sm:$0xff]  ;;  %v752_v39 = vunpack.c.l.s4 %v3174_v38 }
  0xb6   : > { %v721_v40 = vunpack.c.0.s8 %v720_v37 }
  0xb7   : > { %2711 = vmatpush1.bf16.msra.mxu0 %v2710_v45  ;;  %v753_v43 = vunpack.c.0.s8 %v752_v39 }
  0xb8   : > { %2738 = vmatpush3.bf16.msra.mxu1 %v2737_v49  ;;  %2713 = vmatprep.subr.bf16.mxu0 %v2712_v50  ;;  %v3530_v44 = vsub.s32 %v721_v40, %v3523_v34 }
  0xb9   : > { %2739 = vmatprep.subr.bf16.mxu1 %v3167_v0  ;;  %v3533_v50 = vsub.s32 %v753_v43, %v3523_v34 }
  0xbb   : > { %2715 = vmatpush1.bf16.msra.mxu0 %v2714_v55 }
  0xbc   : > { %2741 = vmatpush3.bf16.msra.mxu1 %v2740_v59  ;;  %2717 = vmatprep.subr.bf16.mxu0 %v2716_v60 }
  0xbd   : > { %2742 = vmatprep.subr.bf16.mxu1 %v3167_v0 }
  0xbf   : > { %2719 = vmatpush1.bf16.msra.mxu0 %v2718_v5 }
  0xc0   : > { %2744 = vmatpush3.bf16.msra.mxu1 %v2743_v6  ;;  %2721 = vmatprep.subr.bf16.mxu0 %v2720_v7 }
  0xc1   : > { %2745 = vmatprep.subr.bf16.mxu1 %v3167_v0 }
  0xc3   : > { %2723 = vmatpush1.bf16.msra.mxu0 %v2722_v12 }
  0xc4   : > { %2747 = vmatpush3.bf16.msra.mxu1 %v2746_v13  ;;  %2748 = vmatprep.subr.bf16.mxu0 %v3167_v0 }
  0xc5   : > { %2547 = vmatprep.subr.mxu1 %v3168_v54 }
 0x131   : > { %v491_v14 = vpop.xlane.xlu0 %490 }
 0x132   : > { %v492_v15 = vmul.f32 0.03125, %v491_v14 }
 0x134   : > { %v497_v17 = vmul.f32 %v492_v15, %v492_v15  ;;  %v500_v22 = vsub.f32 %v3482_v1, %v492_v15 }
 0x135   : > { %v495_v16 = vpop.xlane.xlu0 %494 }
 0x136   : > { %v496_v18 = vmul.f32 0.03125, %v495_v16 }
 0x138   : > { %v498_v19 = vsub.f32 %v496_v18, %v497_v17 }
 0x13a   : > { %v499_v20 = vmax.f32 %v498_v19, 0.0 }
 0x13c   : > { %v501_v21 = vadd.f32 1e-05, %v499_v20 }
 0x13e   : > { %2920 = vrsqrt.f32 %v501_v21 }
 0x148   : > { %v2921_v23 = vpop.eup %2920 }
 0x149   : > { %v503_v25 = vmul.f32 %v2921_v23, %v500_v22 }
 0x14b   : > { %v510_v27 = vmul.f32 %v2397_v24, %v503_v25 }
 0x14d   : > { %v517_v28 = vadd.f32 %v2398_v26, %v510_v27 }
 0x14f   : > { %631 = vmatmul.mubr.f32.vlgmr.msra.gmra.mrb[0].mxu0 %v517_v28  ;;  %2545 = vmatmul.mubr.f32.vlgmr.msra.gmra.mrb[0].mxu1 %v517_v28 }
 0x150   : > { %2549 = vmatprep.mubr.msk.f32.mxu1 %vm3169_vm0, %v3168_v54  ;;  %2619 = vmatprep.mubr.msk.f32.mxu0 %vm3169_vm0, %v3168_v54 }
 0x222   : > { %v3510_v29 = vpop.f32.mrb[0].mxu0  ;;  %v3512_v30 = vpop.f32.mrb[0].mxu1 }
 0x223   : > { %v634_v31 = vpop.f32.mrb[1].mxu0  ;;  %v2546_v32 = vpop.f32.mrb[1].mxu1 }
 0x224   : > { %860 = vrot.lane.b32.xlu0 %v634_v31, %s3170_s12  ;;  %854 = vrot.lane.b32.xlu1 %v634_v31, %s3171_s18 }
 0x228   : > { %857 = vrot.lane.b32.xlu1 %v634_v31, %s3172_s7 }
 0x22c   : > { %708 = vrot.lane.b32.xlu1 %v3510_v29, %s3171_s18 }
 0x230   : > { %711 = vrot.lane.b32.xlu1 %v3510_v29, %s3172_s7 }
 0x234   : > { %714 = vrot.lane.b32.xlu1 %v3510_v29, %s3170_s12 }
 0x296   : > { %v861_v41 = vpop.permute.xlu0 %860  ;;  %v855_v42 = vpop.permute.xlu1 %854 }
 0x297   : > { %v879_v45 = vcombine.low %v855_v42, %v861_v41  ;;  %v880_v46 = vcombine.high %v855_v42, %v861_v41 }
 0x299   : > { %v887_v51 = vrot.slane %v879_v45, %v3530_v44  ;;  %v894_v52 = vrot.slane %v880_v46, %v3530_v44 }
 0x29a   : > { %v858_v47 = vpop.permute.xlu1 %857 }
 0x29b   : > { %v863_v48 = vcombine.low %v634_v31, %v858_v47  ;;  %v864_v49 = vcombine.high %v634_v31, %v858_v47 }
 0x29d   : > { %v871_v53 = vrot.slane %v863_v48, %v3530_v44  ;;  %v878_v55 = vrot.slane %v864_v49, %v3530_v44 }
 0x29e   : > { %v709_v56 = vpop.permute.xlu1 %708 }
 0x29f   : > { %v895_v57 = vcombine.low %v871_v53, %v887_v51  ;;  %v896_v58 = vcombine.high %v871_v53, %v887_v51  ;;  %v911_v59 = vcombine.low %v878_v55, %v894_v52  ;;  %v912_v60 = vcombine.high %v878_v55, %v894_v52 }
 0x2a1   : > { %v903_v61 = vrot.slane %v895_v57, %v3533_v50  ;;  %v910_v62 = vrot.slane %v896_v58, %v3533_v50  ;;  %v919_v63 = vrot.slane %v911_v59, %v3533_v50  ;;  %v926_v2 = vrot.slane %v912_v60, %v3533_v50 }
 0x2a2   : > { %v712_v3 = vpop.permute.xlu1 %711 }
 0x2a3   : > { %v931_v4 = vcombine.low %v903_v61, %v910_v62  ;;  %v2401_v5 = vcombine.high %v903_v61, %v910_v62  ;;  %v947_v6 = vcombine.low %v919_v63, %v926_v2  ;;  %v2402_v7 = vcombine.high %v919_v63, %v926_v2 }
 0x2a4   : > { %v717_v12 = vcombine.low %v3510_v29, %v712_v3  ;;  %v718_v13 = vcombine.high %v3510_v29, %v712_v3 }
 0x2a5   : > { %v938_v8 = vrot.slane %v931_v4, %v3530_v44  ;;  %v946_v9 = vrot.slane %v2401_v5, %v3530_v44  ;;  %v954_v10 = vrot.slane %v947_v6, %v3530_v44  ;;  %v962_v11 = vrot.slane %v2402_v7, %v3530_v44 }
 0x2a6   : > { %v715_v14 = vpop.permute.xlu1 %714  ;;  %v725_v21 = vrot.slane %v717_v12, %v3530_v44  ;;  %v732_v22 = vrot.slane %v718_v13, %v3530_v44  ;;  %v3175_v5 = vmov -1e+30  }
 0x2a7   : > { %v963_v15 = vcombine.low %v938_v8, %v946_v9  ;;  %v979_v16 = vcombine.low %v954_v10, %v962_v11  ;;  %v733_v17 = vcombine.low %v709_v56, %v715_v14  ;;  %v734_v18 = vcombine.high %v709_v56, %v715_v14 }
 0x2a8   : > { %v964_v48 = vcombine.high %v938_v8, %v946_v9  ;;  %v980_v49 = vcombine.high %v954_v10, %v962_v11  ;;  %v1150_v6 = vsel %vm1149_vm1, 0.0, %v3175_v5 }
 0x2a9   : > { %v971_v19 = vrot.slane %v963_v15, %v3533_v50  ;;  %v987_v20 = vrot.slane %v979_v16, %v3533_v50  ;;  %v741_v23 = vrot.slane %v733_v17, %v3530_v44  ;;  %v748_v24 = vrot.slane %v734_v18, %v3530_v44 }
 0x2aa   : > { %v978_v58 = vrot.slane %v964_v48, %v3533_v50  ;;  %v994_v59 = vrot.slane %v980_v49, %v3533_v50 }
 0x2ab   : > { %v995_v25 = vcombine.low %v971_v19, %v987_v20  ;;  %v749_v26 = vcombine.low %v725_v21, %v741_v23  ;;  %v750_v27 = vcombine.high %v725_v21, %v741_v23  ;;  %v765_v28 = vcombine.low %v732_v22, %v748_v24 }
 0x2ac   : > { %v766_v29 = vcombine.high %v732_v22, %v748_v24  ;;  %v996_v57 = vcombine.high %v971_v19, %v987_v20  ;;  %v997_v63 = vcombine.low %v978_v58, %v994_v59  ;;  %v998_v3 = vcombine.high %v978_v58, %v994_v59 }
 0x2ad   : > { %2548 = vmatpush3.xpose.msk.msra.mxu1 %vm1151_vm2, %v995_v25  ;;  %v757_v31 = vrot.slane %v749_v26, %v3533_v50  ;;  %v764_v32 = vrot.slane %v750_v27, %v3533_v50  ;;  %v773_v33 = vrot.slane %v765_v28, %v3533_v50 }
 0x2ae   : > { %v780_v36 = vrot.slane %v766_v29, %v3533_v50  ;;  %2552 = vmatprep.subr.mxu1 %v3168_v54 }
 0x2af   : > { %v785_v37 = vcombine.low %v757_v31, %v764_v32  ;;  %v2399_v38 = vcombine.high %v757_v31, %v764_v32 }
 0x2b0   : > { %v801_v39 = vcombine.low %v773_v33, %v780_v36  ;;  %v2400_v40 = vcombine.high %v773_v33, %v780_v36 }
 0x2b1   : > { %v792_v41 = vrot.slane %v785_v37, %v3530_v44  ;;  %v800_v42 = vrot.slane %v2399_v38, %v3530_v44 }
 0x2b2   : > { %v808_v43 = vrot.slane %v801_v39, %v3530_v44  ;;  %v816_v45 = vrot.slane %v2400_v40, %v3530_v44 }
 0x2b3   : > { %v817_v46 = vcombine.low %v792_v41, %v800_v42  ;;  %v818_v53 = vcombine.high %v792_v41, %v800_v42 }
 0x2b4   : > { %v833_v47 = vcombine.low %v808_v43, %v816_v45  ;;  %v834_v55 = vcombine.high %v808_v43, %v816_v45 }
 0x2b5   : > { %v825_v51 = vrot.slane %v817_v46, %v3533_v50  ;;  %v832_v61 = vrot.slane %v818_v53, %v3533_v50 }
 0x2b6   : > { %v841_v52 = vrot.slane %v833_v47, %v3533_v50  ;;  %v848_v62 = vrot.slane %v834_v55, %v3533_v50 }
 0x2b8   : > { %v849_v56 = vcombine.low %v825_v51, %v841_v52  ;;  %v850_v60 = vcombine.high %v825_v51, %v841_v52  ;;  %v851_v2 = vcombine.low %v832_v61, %v848_v62  ;;  %v852_v4 = vcombine.high %v832_v61, %v848_v62 }
 0x2ba   : > { %2550 = vmatmul.mubr.msk.f32.vlgmr.msra.gmra.mrb[2].mxu1 %vm1151_vm2, %v849_v56 }
 0x2bb   : > { %2553 = vmatpush3.xpose.msk.msra.mxu1 %vm1151_vm2, %v996_v57  ;;  %2554 = vmatprep.mubr.msk.f32.mxu1 %vm3169_vm0, %v3168_v54 }
 0x2bc   : > { %2557 = vmatprep.subr.mxu1 %v3168_v54 }
 0x2be   : > { %2555 = vmatmul.mubr.msk.f32.vlgmr.msra.gmra.mrb[4].mxu1 %vm1151_vm2, %v850_v60 }
 0x2bf   : > { %2558 = vmatpush3.xpose.msk.msra.mxu1 %vm1151_vm2, %v997_v63  ;;  %2559 = vmatprep.mubr.msk.f32.mxu1 %vm3169_vm0, %v3168_v54 }
 0x2c0   : > { %2562 = vmatprep.subr.mxu1 %v3168_v54 }
 0x2c2   : > { %2560 = vmatmul.mubr.msk.f32.vlgmr.msra.gmra.mrb[6].mxu1 %vm1151_vm2, %v851_v2 }
 0x2c3   : > { %2563 = vmatpush3.xpose.msk.msra.mxu1 %vm1151_vm2, %v998_v3  ;;  %2564 = vmatprep.mubr.msk.f32.mxu1 %vm3169_vm0, %v3168_v54 }
 0x2c4   : > { %2567 = vmatprep.subr.mxu1 %v3168_v54 }
 0x2c6   : > { %2565 = vmatmul.mubr.msk.f32.vlgmr.msra.gmra.mrb[8].mxu1 %vm1151_vm2, %v852_v4 }
 0x2c7   : > { %2569 = vmatprep.mubr.msk.f32.mxu1 %vm3169_vm0, %v3168_v54 }
 0x38d   : > { %v1224_v7 = vpop.f32.mrb[2].mxu1 }
 0x38e   : > { %v1225_v8 = vadd.f32 %v1224_v7, %v1150_v6  ;;  %v2551_v9 = vpop.f32.mrb[3].mxu1 }
 0x390   : > { %v1457_v10 = vsel %vm1456_vm3, %v1225_v8, -inf }
 0x391   : > { %1458 = vmax.xlane.f32.xlu1 %v1457_v10  ;;  %v1300_v11 = vpop.f32.mrb[4].mxu1 }
 0x392   : > { %v1301_v12 = vadd.f32 %v1300_v11, %v1150_v6  ;;  %v2556_v13 = vpop.f32.mrb[5].mxu1 }
 0x394   : > { %v1460_v14 = vsel %vm1456_vm3, %v1301_v12, -inf }
 0x395   : > { %1461 = vmax.xlane.f32.xlu0 %v1460_v14  ;;  %v1376_v15 = vpop.f32.mrb[6].mxu1 }
 0x396   : > { %v1377_v16 = vadd.f32 %v1376_v15, %v1150_v6  ;;  %v2561_v17 = vpop.f32.mrb[7].mxu1 }
 0x398   : > { %v1463_v18 = vsel %vm1456_vm3, %v1377_v16, -inf }
 0x399   : > { %1464 = vmax.xlane.f32.xlu1 %v1463_v18  ;;  %v1452_v34 = vpop.f32.mrb[8].mxu1 }
 0x39a   : > { %v1453_v35 = vadd.f32 %v1452_v34, %v1150_v6  ;;  %v2566_v19 = vpop.f32.mrb[9].mxu1 }
 0x39c   : > { %v1466_v20 = vsel %vm1456_vm3, %v1453_v35, -inf }
 0x39d   : > { %1467 = vmax.xlane.f32.xlu1 %v1466_v20 }
 0x3ae   : > { %1003 = vrot.lane.b32.xlu1 %v3512_v30, %s3172_s7 }
 0x41e   : > { %v1459_v21 = vpop.xlane.xlu1 %1458 }
 0x41f   : > { %v1469_v22 = vsub.f32 %v1225_v8, %v1459_v21 }
 0x421   : > { %v1473_v23 = vmul.f32 1.442695, %v1469_v22 }
 0x422   : > { %v1462_v24 = vpop.xlane.xlu0 %1461 }
 0x423   : > { %2922 = vpow2.f32 %v1473_v23  ;;  %v1470_v25 = vsub.f32 %v1301_v12, %v1462_v24 }
 0x425   : > { %v1475_v26 = vmul.f32 1.442695, %v1470_v25 }
 0x426   : > { %v1465_v32 = vpop.xlane.xlu1 %1464 }
 0x427   : > { %2924 = vpow2.f32 %v1475_v26  ;;  %v1471_v33 = vsub.f32 %v1377_v16, %v1465_v32 }
 0x429   : > { %v1477_v37 = vmul.f32 1.442695, %v1471_v33 }
 0x42a   : > { %v1468_v36 = vpop.xlane.xlu1 %1467 }
 0x42b   : > { %v1472_v38 = vsub.f32 %v1453_v35, %v1468_v36  ;;  %2926 = vpow2.f32 %v1477_v37  ;;  %v1946_v36 = vld [vmem:[#allocation7] sm:$0xff]  ;;  %v1947_v37 = vld [vmem:[#allocation7 + $0x8] sm:$0xff] }
 0x42d   : > { %v2923_v27 = vpop.eup %2922  ;;  %v1479_v39 = vmul.f32 1.442695, %v1472_v38  ;;  %v1948_v38 = vld [vmem:[#allocation7 + $0x10] sm:$0xff] }
 0x42e   : > { %v1481_v28 = vsel %vm1456_vm3, %v2923_v27, 0.0  ;;  %v1004_v45 = vpop.permute.xlu1 %1003 }
 0x42f   : > { %1482 = vadd.xlane.f32.xlu0 %v1481_v28  ;;  %2928 = vpow2.f32 %v1479_v39  ;;  %v1009_v48 = vcombine.low %v3512_v30, %v1004_v45  ;;  %v1010_v49 = vcombine.high %v3512_v30, %v1004_v45  ;;  %v2749_v39 = vpack.c.bf16 %v1947_v37, %v1946_v36  ;;  %v1951_v45 = vld [vmem:[#allocation7 + $0x28] sm:$0xff] }
 0x431   : > { %v3599_v29 = vpop.eup %2924  ;;  %v1017_v56 = vrot.slane %v1009_v48, %v3530_v44  ;;  %v1024_v57 = vrot.slane %v1010_v49, %v3530_v44  ;;  %2750 = vmatpush3.bf16.msra.mxu0 %v2749_v39  ;;  %v1954_v49 = vld [vmem:[#allocation7 + $0x40] sm:$0xff] }
 0x432   : > { %v1484_v31 = vsel %vm1456_vm3, %v3599_v29, 0.0  ;;  %2751 = vmatprep.subr.bf16.mxu0 %v3167_v0 }
 0x433   : > { %1485 = vadd.xlane.f32.xlu1 %v1484_v31 }
 0x435   : > { %v3607_v40 = vpop.eup %2926 }
 0x436   : > { %v1487_v41 = vsel %vm1456_vm3, %v3607_v40, 0.0 }
 0x439   : > { %v3611_v42 = vpop.eup %2928 }
 0x43a   : > { %v1490_v43 = vsel %vm1456_vm3, %v3611_v42, 0.0 }
 0x444   : > { %1006 = vrot.lane.b32.xlu1 %v3512_v30, %s3170_s12 }
 0x445   : > { %1000 = vrot.lane.b32.xlu0 %v3512_v30, %s3171_s18 }
 0x464   : > { %1488 = vadd.xlane.f32.xlu0 %v1487_v41 }
 0x468   : > { %1491 = vadd.xlane.f32.xlu1 %v1490_v43  ;;  %v1950_v43 = vld [vmem:[#allocation7 + $0x20] sm:$0xff] }
 0x4bc   : > { %v1483_v46 = vpop.xlane.xlu0 %1482 }
 0x4bd   : > { %2930 = vrcp.f32 %v1483_v46  ;;  %v1952_v46 = vld [vmem:[#allocation7 + $0x30] sm:$0xff] }
 0x4c0   : > { %v1486_v47 = vpop.xlane.xlu1 %1485  ;;  %v1001_v51 = vpop.permute.xlu0 %1000 }
 0x4c1   : > { %2932 = vrcp.f32 %v1486_v47  ;;  %v1953_v47 = vld [vmem:[#allocation7 + $0x38] sm:$0xff] }
 0x4c2   : > { %v2758_v48 = vpack.c.bf16 %v1953_v47, %v1952_v46 }
 0x4c4   : > { %v1007_v52 = vpop.permute.xlu1 %1006 }
 0x4c5   : > { %v1025_v53 = vcombine.low %v1001_v51, %v1007_v52  ;;  %v1026_v55 = vcombine.high %v1001_v51, %v1007_v52  ;;  %v1955_v51 = vld [vmem:[#allocation7 + $0x48] sm:$0xff] }
 0x4c6   : > { %v2761_v52 = vpack.c.bf16 %v1955_v51, %v1954_v49 }
 0x4c7   : > { %v1033_v58 = vrot.slane %v1025_v53, %v3530_v44  ;;  %v1040_v59 = vrot.slane %v1026_v55, %v3530_v44  ;;  %v2931_v15 = vpop.eup %2930  ;;  %v1956_v53 = vld [vmem:[#allocation7 + $0x50] sm:$0xff]  ;;  %v1957_v55 = vld [vmem:[#allocation7 + $0x58] sm:$0xff] }
 0x4c8   : > { %v1497_v20 = vmul.f32 %v2931_v15, %v2923_v27 }
 0x4c9   : > { %v1041_v60 = vcombine.low %v1017_v56, %v1033_v58  ;;  %v1042_v61 = vcombine.high %v1017_v56, %v1033_v58  ;;  %v1057_v62 = vcombine.low %v1024_v57, %v1040_v59  ;;  %v1058_v63 = vcombine.high %v1024_v57, %v1040_v59  ;;  %v1958_v57 = vld [vmem:[#allocation7 + $0x60] sm:$0xff]  ;;  %v1959_v58 = vld [vmem:[#allocation7 + $0x68] sm:$0xff] }
 0x4ca   : > { %v2764_v56 = vpack.c.bf16 %v1957_v55, %v1956_v53  ;;  %v2767_v59 = vpack.c.bf16 %v1959_v58, %v1958_v57  ;;  %v2419_v55 = vld [vmem:[%s3774_s5] ss:$0 sm:$0xff] }
 0x4cb   : > { %v1049_v2 = vrot.slane %v1041_v60, %v3533_v50  ;;  %v1056_v30 = vrot.slane %v1042_v61, %v3533_v50  ;;  %v1065_v3 = vrot.slane %v1057_v62, %v3533_v50  ;;  %v1072_v4 = vrot.slane %v1058_v63, %v3533_v50  ;;  %v2933_v19 = vpop.eup %2932 }
 0x4cc   : > { %v1498_v24 = vmul.f32 %v2933_v19, %v3599_v29 }
 0x4cd   : > { %v1077_v5 = vcombine.low %v1049_v2, %v1056_v30  ;;  %v2403_v6 = vcombine.high %v1049_v2, %v1056_v30  ;;  %v1093_v7 = vcombine.low %v1065_v3, %v1072_v4  ;;  %v2404_v8 = vcombine.high %v1065_v3, %v1072_v4 }
 0x4cf   : > { %v1084_v9 = vrot.slane %v1077_v5, %v3530_v44  ;;  %v1092_v10 = vrot.slane %v2403_v6, %v3530_v44  ;;  %v1100_v11 = vrot.slane %v1093_v7, %v3530_v44  ;;  %v1108_v12 = vrot.slane %v2404_v8, %v3530_v44 }
 0x4d1   : > { %v1109_v13 = vcombine.low %v1084_v9, %v1092_v10  ;;  %v1125_v14 = vcombine.low %v1100_v11, %v1108_v12  ;;  %v1110_v18 = vcombine.high %v1084_v9, %v1092_v10  ;;  %v1126_v34 = vcombine.high %v1100_v11, %v1108_v12 }
 0x4d3   : > { %v1117_v16 = vrot.slane %v1109_v13, %v3533_v50  ;;  %v1133_v17 = vrot.slane %v1125_v14, %v3533_v50  ;;  %v1124_v22 = vrot.slane %v1110_v18, %v3533_v50  ;;  %v1140_v23 = vrot.slane %v1126_v34, %v3533_v50  ;;  %v1961_v18 = vld [vmem:[#allocation7 + $0x78] sm:$0xff] }
 0x4d5   : > { %v1141_v35 = vcombine.low %v1117_v16, %v1133_v17  ;;  %v1142_v21 = vcombine.high %v1117_v16, %v1133_v17  ;;  %v1143_v25 = vcombine.low %v1124_v22, %v1140_v23  ;;  %v1144_v32 = vcombine.high %v1124_v22, %v1140_v23  ;;  %v1960_v17 = vld [vmem:[#allocation7 + $0x70] sm:$0xff] }
 0x4d7   : > { %2568 = vmatpush3.msra.mxu1 %v1141_v35 }
 0x4d8   : > { %2570 = vmatmul.mubr.msk.f32.vlgmr.msra.gmra.mrb[10].mxu1 %vm1456_vm3, %v1497_v20  ;;  %2572 = vmatprep.subr.mxu1 %v3168_v54 }
 0x4d9   : > { %2573 = vmatpush3.msra.mxu1 %v1142_v21  ;;  %2574 = vmatprep.mubr.msk.f32.mxu1 %vm3169_vm0, %v3168_v54  ;;  %v2770_v21 = vpack.c.bf16 %v1961_v18, %v1960_v17  ;;  %v2164_v17 = vld [vmem:[#allocation10] sm:$0xff]  ;;  %v2165_v18 = vld [vmem:[#allocation10 + $0x8] sm:$0xff] }
 0x4da   : > { %2577 = vmatprep.subr.mxu1 %v3168_v54 }
 0x4dc   : > { %2575 = vmatmul.mubr.msk.f32.vlgmr.msra.gmra.mrb[12].mxu1 %vm1456_vm3, %v1498_v24 }
 0x4dd   : > { %2578 = vmatpush3.msra.mxu1 %v1143_v25  ;;  %2579 = vmatprep.mubr.msk.f32.mxu1 %vm3169_vm0, %v3168_v54 }
 0x4de   : > { %2582 = vmatprep.subr.mxu1 %v3168_v54 }
 0x4f1   : > { %v1489_v26 = vpop.xlane.xlu0 %1488 }
 0x4f2   : > { %2934 = vrcp.f32 %v1489_v26 }
 0x4f5   : > { %v1492_v27 = vpop.xlane.xlu1 %1491 }
 0x4f6   : > { %2936 = vrcp.f32 %v1492_v27 }
 0x4fc   : > { %v2935_v28 = vpop.eup %2934 }
 0x4fd   : > { %v1499_v31 = vmul.f32 %v2935_v28, %v3607_v40  ;;  %v1949_v40 = vld [vmem:[#allocation7 + $0x18] sm:$0xff] }
 0x4fe   : > { %v2752_v41 = vpack.c.bf16 %v1949_v40, %v1948_v38 }
 0x4ff   : > { %2580 = vmatmul.mubr.msk.f32.vlgmr.msra.gmra.mrb[14].mxu1 %vm1456_vm3, %v1499_v31 }
 0x500   : > { %v2937_v29 = vpop.eup %2936  ;;  %2583 = vmatpush3.msra.mxu1 %v1144_v32  ;;  %2584 = vmatprep.mubr.msk.f32.mxu1 %vm3169_vm0, %v3168_v54 }
 0x501   : > { %v1500_v33 = vmul.f32 %v2937_v29, %v3611_v42  ;;  %2772 = vmatprep.subr.bf16.mxu1 %v3167_v0  ;;  %2753 = vmatpush3.bf16.msra.mxu0 %v2752_v41  ;;  %v2755_v42 = vpack.c.bf16 %v1951_v45, %v1950_v43 }
 0x502   : > { %2754 = vmatprep.subr.bf16.mxu0 %v3167_v0 }
 0x503   : > { %2585 = vmatmul.mubr.msk.f32.vlgmr.msra.gmra.mrb[16].mxu1 %vm1456_vm3, %v1500_v33 }
 0x504   : > { %2654 = vmatprep.mubr.msk.f32.mxu1 %vm3169_vm0, %v3168_v54 }
 0x505   : > { %2756 = vmatpush3.bf16.msra.mxu0 %v2755_v42 }
 0x506   : > { %2757 = vmatprep.subr.bf16.mxu0 %v3167_v0 }
 0x509   : > { %2759 = vmatpush3.bf16.msra.mxu0 %v2758_v48 }
 0x50a   : > { %2760 = vmatprep.subr.bf16.mxu0 %v3167_v0 }
 0x50d   : > { %2762 = vmatpush3.bf16.msra.mxu0 %v2761_v52  ;;  %v2071_v52 = vld [vmem:[#allocation8 + $0x8] sm:$0xff] }
 0x50e   : > { %2763 = vmatprep.subr.bf16.mxu0 %v3167_v0 }
 0x511   : > { %2765 = vmatpush3.bf16.msra.mxu0 %v2764_v56 }
 0x512   : > { %2766 = vmatprep.subr.bf16.mxu0 %v3167_v0 }
 0x515   : > { %2768 = vmatpush3.bf16.msra.mxu0 %v2767_v59 }
 0x516   : > { %2769 = vmatprep.subr.bf16.mxu0 %v3167_v0 }
 0x519   : > { %2771 = vmatpush3.bf16.msra.mxu0 %v2770_v21  ;;  %v2168_v21 = vld [vmem:[#allocation10 + $0x20] sm:$0xff] }
 0x51a   : > { %2796 = vmatprep.subr.bf16.mxu0 %v3167_v0 }
 0x5ab   : > { %v1570_v60 = vpop.f32.mrb[10].mxu1 }
 0x5ac   : > { %v2571_v61 = vpop.f32.mrb[11].mxu1 }
 0x5ad   : > { %v2073_v61 = vld [vmem:[#allocation8 + $0x18] sm:$0xff] }
 0x5af   : > { %v1643_v62 = vpop.f32.mrb[12].mxu1 }
 0x5b0   : > { %v2576_v63 = vpop.f32.mrb[13].mxu1 }
 0x5b1   : > { %v2074_v63 = vld [vmem:[#allocation8 + $0x20] sm:$0xff] }
 0x5d2   : > { %v1716_v2 = vpop.f32.mrb[14].mxu1 }
 0x5d3   : > { %v1793_v30 = vcombine.low %v1570_v60, %v1716_v2  ;;  %v1794_v3 = vcombine.high %v1570_v60, %v1716_v2  ;;  %v2581_v4 = vpop.f32.mrb[15].mxu1  ;;  %v2072_v60 = vld [vmem:[#allocation8 + $0x10] sm:$0xff]  ;;  %v2075_v2 = vld [vmem:[#allocation8 + $0x28] sm:$0xff] }
 0x5d5   : > { %v1801_v9 = vrot.slane %v1793_v30, %v3530_v44  ;;  %v1808_v10 = vrot.slane %v1794_v3, %v3530_v44  ;;  %v2779_v30 = vpack.c.bf16 %v2075_v2, %v2074_v63  ;;  %v2077_v3 = vld [vmem:[#allocation8 + $0x38] sm:$0xff] }
 0x5d6   : > { %v1789_v5 = vpop.f32.mrb[16].mxu1 }
 0x5d7   : > { %v1809_v6 = vcombine.low %v1643_v62, %v1789_v5  ;;  %v1810_v7 = vcombine.high %v1643_v62, %v1789_v5  ;;  %v2586_v8 = vpop.f32.mrb[17].mxu1  ;;  %v2776_v62 = vpack.c.bf16 %v2073_v61, %v2072_v60  ;;  %v2078_v5 = vld [vmem:[#allocation8 + $0x40] sm:$0xff] }
 0x5d9   : > { %v1817_v11 = vrot.slane %v1809_v6, %v3530_v44  ;;  %v1824_v12 = vrot.slane %v1810_v7, %v3530_v44  ;;  %v2079_v6 = vld [vmem:[#allocation8 + $0x48] sm:$0xff]  ;;  %v2080_v7 = vld [vmem:[#allocation8 + $0x50] sm:$0xff] }
 0x5da   : > { %v2785_v8 = vpack.c.bf16 %v2079_v6, %v2078_v5 }
 0x5db   : > { %v1825_v13 = vcombine.low %v1801_v9, %v1817_v11  ;;  %v1826_v14 = vcombine.high %v1801_v9, %v1817_v11  ;;  %v1841_v15 = vcombine.low %v1808_v10, %v1824_v12  ;;  %v1842_v16 = vcombine.high %v1808_v10, %v1824_v12  ;;  %v2081_v9 = vld [vmem:[#allocation8 + $0x58] sm:$0xff]  ;;  %v2082_v11 = vld [vmem:[#allocation8 + $0x60] sm:$0xff]  ;;  %v2083_v12 = vld [vmem:[#allocation8 + $0x68] sm:$0xff] }
 0x5dc   : > { %v2788_v10 = vpack.c.bf16 %v2081_v9, %v2080_v7 }
 0x5dd   : > { %v1833_v34 = vrot.slane %v1825_v13, %v3533_v50  ;;  %v1840_v35 = vrot.slane %v1826_v14, %v3533_v50  ;;  %v1849_v19 = vrot.slane %v1841_v15, %v3533_v50  ;;  %v1856_v20 = vrot.slane %v1842_v16, %v3533_v50  ;;  %v2084_v14 = vld [vmem:[#allocation8 + $0x70] sm:$0xff]  ;;  %v2085_v15 = vld [vmem:[#allocation8 + $0x78] sm:$0xff] }
 0x5de   : > { %v2791_v13 = vpack.c.bf16 %v2083_v12, %v2082_v11  ;;  %v2794_v16 = vpack.c.bf16 %v2085_v15, %v2084_v14 }
 0x5df   : > { %v1861_v22 = vcombine.low %v1833_v34, %v1840_v35  ;;  %v2417_v23 = vcombine.high %v1833_v34, %v1840_v35  ;;  %v1877_v24 = vcombine.low %v1849_v19, %v1856_v20  ;;  %v2418_v25 = vcombine.high %v1849_v19, %v1856_v20  ;;  %v2166_v34 = vld [vmem:[#allocation10 + $0x10] sm:$0xff]  ;;  %v2167_v19 = vld [vmem:[#allocation10 + $0x18] sm:$0xff] }
 0x5e0   : > { %v2797_v35 = vpack.c.bf16 %v2165_v18, %v2164_v17  ;;  %v2800_v20 = vpack.c.bf16 %v2167_v19, %v2166_v34 }
 0x5e1   : > { %v1868_v26 = vrot.slane %v1861_v22, %v3530_v44  ;;  %v1876_v27 = vrot.slane %v2417_v23, %v3530_v44  ;;  %v1884_v28 = vrot.slane %v1877_v24, %v3530_v44  ;;  %v1892_v31 = vrot.slane %v2418_v25, %v3530_v44  ;;  %v2169_v22 = vld [vmem:[#allocation10 + $0x28] sm:$0xff]  ;;  %v2170_v24 = vld [vmem:[#allocation10 + $0x30] sm:$0xff]  ;;  %v2171_v25 = vld [vmem:[#allocation10 + $0x38] sm:$0xff] }
 0x5e2   : > { %v2803_v23 = vpack.c.bf16 %v2169_v22, %v2168_v21 }
 0x5e3   : > { %v1894_v32 = vcombine.high %v1868_v26, %v1876_v27  ;;  %v1910_v29 = vcombine.high %v1884_v28, %v1892_v31  ;;  %v1893_v33 = vcombine.low %v1868_v26, %v1876_v27  ;;  %v1909_v36 = vcombine.low %v1884_v28, %v1892_v31  ;;  %v2172_v27 = vld [vmem:[#allocation10 + $0x40] sm:$0xff]  ;;  %v2173_v28 = vld [vmem:[#allocation10 + $0x48] sm:$0xff] }
 0x5e4   : > { %v2806_v26 = vpack.c.bf16 %v2171_v25, %v2170_v24  ;;  %v2809_v31 = vpack.c.bf16 %v2173_v28, %v2172_v27 }
 0x5e5   : > { %v1908_v37 = vrot.slane %v1894_v32, %v3533_v50  ;;  %v1924_v38 = vrot.slane %v1910_v29, %v3533_v50  ;;  %v1901_v39 = vrot.slane %v1893_v33, %v3533_v50  ;;  %v1917_v40 = vrot.slane %v1909_v36, %v3533_v50  ;;  %v2070_v50 = vld [vmem:[#allocation8] sm:$0xff]  ;;  %v2174_v32 = vld [vmem:[#allocation10 + $0x50] sm:$0xff]  ;;  %v2175_v29 = vld [vmem:[#allocation10 + $0x58] sm:$0xff] }
 0x5e6   : > { %v2773_v53 = vpack.c.bf16 %v2071_v52, %v2070_v50  ;;  %v2812_v33 = vpack.c.bf16 %v2175_v29, %v2174_v32  ;;  %v2176_v36 = vld [vmem:[#allocation10 + $0x60] sm:$0xff] }
 0x5e7   : > { %v1927_v41 = vcombine.low %v1908_v37, %v1924_v38  ;;  %v1926_v43 = vcombine.high %v1901_v39, %v1917_v40  ;;  %v1928_v45 = vcombine.high %v1908_v37, %v1924_v38  ;;  %v1925_v42 = vcombine.low %v1901_v39, %v1917_v40  ;;  %v2177_v37 = vld [vmem:[#allocation10 + $0x68] sm:$0xff] }
 0x5e8   : > { %2774 = vmatpush3.bf16.msra.mxu1 %v2773_v53  ;;  %v2815_v38 = vpack.c.bf16 %v2177_v37, %v2176_v36  ;;  %v2178_v53 = vld [vmem:[#allocation10 + $0x70] sm:$0xff] }
 0x5e9   : > { %1934 = vrot.lane.b32.xlu1 %v1927_v41, %s3172_s7  ;;  %1930 = vrot.lane.b32.xlu0 %v1926_v43, %s3170_s12  ;;  %s3807_s12 = sld [smem:[#allocation18_spill]] }
 0x5ea   : > { %2775 = vmatprep.subr.bf16.mxu1 %v3167_v0 }
 0x5ec   : > { %2777 = vmatpush3.bf16.msra.mxu1 %v2776_v62  ;;  %v2423_v62 = vld [vmem:[%s3808_s11] ss:$0 sm:$0xff] }
 0x5ed   : > { %1938 = vrot.lane.b32.xlu0 %v1928_v45, %s3171_s18  ;;  %2778 = vmatprep.subr.bf16.mxu1 %v3167_v0 }
 0x5f0   : > { %2780 = vmatpush3.bf16.msra.mxu1 %v2779_v30 }
 0x5f1   : > { %2781 = vmatprep.subr.bf16.mxu1 %v3167_v0 }
 0x65b   : > { %v1931_v44 = vpop.permute.xlu0 %1930  ;;  %v1935_v46 = vpop.permute.xlu1 %1934 }
 0x65c   : > { %v1941_v47 = vsel %vm1151_vm2, %v1925_v42, %v1931_v44 }
 0x65d   : > { %v1943_v49 = vsel %vm1942_vm4, %v1941_v47, %v1935_v46 }
 0x65f   : > { %v1939_v48 = vpop.permute.xlu0 %1938 }
 0x660   : > { %v1945_v51 = vsel %vm1944_vm5, %v1943_v49, %v1939_v48  ;;  %v2420_v49 = vld [vmem:[%s3775_s6] ss:$0 sm:$0xff] }
 0x661   : > { %2620 = vmatmul.mubr.f32.vlgmr.msra.gmra.mrb[2].mxu0 %v1945_v51 }
 0x662   : > { %2689 = vmatprep.mubr.msk.f32.mxu0 %vm3169_vm0, %v3168_v54  ;;  %2798 = vmatpush3.bf16.msra.mxu0 %v2797_v35 }
 0x663   : > { %2799 = vmatprep.subr.bf16.mxu0 %v3167_v0 }
 0x666   : > { %2801 = vmatpush3.bf16.msra.mxu0 %v2800_v20 }
 0x667   : > { %2802 = vmatprep.subr.bf16.mxu0 %v3167_v0 }
 0x66a   : > { %2804 = vmatpush3.bf16.msra.mxu0 %v2803_v23 }
 0x66b   : > { %2805 = vmatprep.subr.bf16.mxu0 %v3167_v0 }
 0x66e   : > { %2807 = vmatpush3.bf16.msra.mxu0 %v2806_v26 }
 0x66f   : > { %2808 = vmatprep.subr.bf16.mxu0 %v3167_v0 }
 0x672   : > { %2810 = vmatpush3.bf16.msra.mxu0 %v2809_v31 }
 0x673   : > { %2811 = vmatprep.subr.bf16.mxu0 %v3167_v0 }
 0x676   : > { %2813 = vmatpush3.bf16.msra.mxu0 %v2812_v33 }
 0x677   : > { %2814 = vmatprep.subr.bf16.mxu0 %v3167_v0 }
 0x67a   : > { %2816 = vmatpush3.bf16.msra.mxu0 %v2815_v38 }
 0x67b   : > { %2817 = vmatprep.subr.bf16.mxu0 %v3167_v0 }
 0x734   : > { %v2035_v56 = vpop.f32.mrb[2].mxu0 }
 0x735   : > { %v2036_v57 = vadd.f32 %v2419_v55, %v2035_v56  ;;  %v2621_v58 = vpop.f32.mrb[3].mxu0  ;;  %v2179_v55 = vld [vmem:[#allocation10 + $0x78] sm:$0xff] }
 0x736   : > { %v2818_v56 = vpack.c.bf16 %v2179_v55, %v2178_v53 }
 0x737   : > { %v3687_v59 = vadd.f32 %v2036_v57, %v3482_v1  ;;  %v2076_v1 = vld [vmem:[#allocation8 + $0x30] sm:$0xff] }
 0x738   : > { %v2782_v4 = vpack.c.bf16 %v2077_v3, %v2076_v1  ;;  %2819 = vmatpush3.bf16.msra.mxu0 %v2818_v56  ;;  %v2422_v57 = vld [vmem:[%s3807_s12] ss:$0 sm:$0xff]  ;;  %s3086_s12 = sshll.u32 %s3176_s26, 4  ;;  %s3087_s12 = int_to_ptr.vmem [resolvable:$false] %s3086_s12 }
 0x739   : > { %2042 = vadd.xlane.f32.xlu1 %v3687_v59  ;;  %v2045_v54 = vmul.f32 %v3687_v59, %v3687_v59  ;;  %s3088_s18 = scalar_lea.vmem %s3087_s12, 256  ;;  %p3089_p10 = scmp.lt.s32.totalorder %s3727_s20, %s3087_s12 }
 0x73a   : > { %2783 = vmatpush3.bf16.msra.mxu1 %v2782_v4  ;;  %p3090_p1 = scmp.lt.s32.totalorder %s3088_s18, %s3082_s27 }
 0x73b   : > { %2046 = vadd.xlane.f32.xlu0 %v2045_v54  ;;  %2784 = vmatprep.subr.bf16.mxu1 %v3167_v0 }
 0x73c   : > { %p3091_p11 = por %p3090_p1, %p3089_p10 }
 0x73e   : > { %2786 = vmatpush3.bf16.msra.mxu1 %v2785_v8  ;;  %p3092_p12 = pnand %p3091_p11, %p3085_p5 }
 0x73f   : > { %2787 = vmatprep.subr.bf16.mxu1 %v3167_v0 }
 0x742   : > { %2789 = vmatpush3.bf16.msra.mxu1 %v2788_v10 }
 0x743   : > { %2790 = vmatprep.subr.bf16.mxu1 %v3167_v0 }
 0x746   : > { %2792 = vmatpush3.bf16.msra.mxu1 %v2791_v13 }
 0x747   : > { %2793 = vmatprep.subr.bf16.mxu1 %v3167_v0  ;;  %v2421_v0 = vld [vmem:[%s3806_s9] ss:$0 sm:$0xff]  ;;  %s3809_s9 = sld [smem:[#allocation20_spill]] }
 0x74a   : > { %2795 = vmatpush3.bf16.msra.mxu1 %v2794_v16 }
 0x74d   : > { %s3725_s13 = scalar_lea.hbm %s3809_s9, %s2425_s14 }
 0x7c6   : > { %v2043_v39 = vpop.xlane.xlu1 %2042 }
 0x7c7   : > { %v2044_v40 = vmul.f32 0.03125, %v2043_v39 }
 0x7c8   : > { %v2047_v41 = vpop.xlane.xlu0 %2046 }
 0x7c9   : > { %v2049_v43 = vmul.f32 %v2044_v40, %v2044_v40  ;;  %v2048_v45 = vmul.f32 0.03125, %v2047_v41  ;;  %v2052_v47 = vsub.f32 %v3687_v59, %v2044_v40 }
 0x7cb   : > { %v2050_v42 = vsub.f32 %v2048_v45, %v2049_v43 }
 0x7cd   : > { %v2051_v44 = vmax.f32 %v2050_v42, 0.0 }
 0x7cf   : > { %v2053_v46 = vadd.f32 1e-05, %v2051_v44 }
 0x7d1   : > { %2938 = vrsqrt.f32 %v2053_v46 }
 0x7db   : > { %v2939_v48 = vpop.eup %2938 }
 0x7dc   : > { %v2055_v51 = vmul.f32 %v2939_v48, %v2052_v47 }
 0x7de   : > { %v2062_v50 = vmul.f32 %v2420_v49, %v2055_v51 }
 0x7e0   : > { %v2069_v52 = vadd.f32 %v2421_v0, %v2062_v50 }
 0x7e2   : > { %2655 = vmatmul.mubr.f32.vlgmr.msra.gmra.mrb[18].mxu1 %v2069_v52 }
 0x8b5   : > { %v2159_v58 = vpop.f32.mrb[18].mxu1 }
 0x8b6   : > { %v2160_v54 = vadd.f32 %v2422_v57, %v2159_v58  ;;  %v2656_v60 = vpop.f32.mrb[19].mxu1 }
 0x8b8   : > { %v2163_v61 = vmax.f32 %v2160_v54, 0.0 }
 0x8ba   : > { %2690 = vmatmul.mubr.f32.vlgmr.msra.gmra.mrb[4].mxu0 %v2163_v61 }
 0x98d   : > { %v2253_v63 = vpop.f32.mrb[4].mxu0 }
 0x98e   : > { %v2254_v2 = vadd.f32 %v2423_v62, %v2253_v63  ;;  %v2691_v30 = vpop.f32.mrb[5].mxu0 }
 0x990   : > { %v2257_v1 = vadd.f32 %v2254_v2, %v3687_v59 }
 0x992   : > { %2258 = vst [vmem:[%s486_s16] sm:$0xff] %v2257_v1 }
 0x993   : > { %3095 = shalt.err (!%p3092_p12)
}
 0x994   : > { %s3096_s3 = scalar_lea.hbm %s3725_s13, 128  ;;  %s3100_s14 = scalar_lea.hbm %s3809_s9, 256 }
 0x995   : > { %p3097_p13 = scmp.ne.s32.totalorder %s3725_s13, %s3096_s3  ;;  %p3101_p9 = scmp.lt.u32.totalorder %s3725_s13, %s3809_s9 }
 0x996   : > { %p3102_p4 = scmp.lt.u32.totalorder %s3100_s14, %s3096_s3  ;;  %p3104_p6 = scmp.lt.u32.totalorder %s3096_s3, %s3725_s13 }
 0x997   : > { %p3098_p3 = pnand %p3097_p13, %p3810_p0 }
 0x998   : > { %p3103_p8 = por %p3102_p4, %p3101_p9 }
 0x999   : > { %p3099_p7 = pneg %p3098_p3 }
 0x99a   : > { %p3105_p2 = por %p3104_p6, %p3103_p8 }
 0x99c   : > { %p3106_p5 = pnand %p3105_p2, %p3099_p7 }
 0x99e   : > { %3109 = shalt.err (!%p3106_p5)
}
 0x99f   : > { %2838 = dma.vmem_to_hbm [thread:$0]  (%p3810_p0), %s3727_s20, 128, %s3725_s13, %s2260_s29  }
 0x9a0 PF: > { %s2285_s28 = sand.u32 1, %s3144_s21   ;;  %p3811_p10 = scmp.ne.s32.totalorder %s3799_s30, 0 }
 0x9a1   : > { %p3812_p1 = scmp.ge.s32.totalorder %s3156_s24, 2  ;;  %s2286_s27 = scalar_lea.sflag [#allocation4], %s2285_s28 }
 0x9a3   : > { %p2858_p11 = pnand %p3812_p1, %p3811_p10 }
 0x9a5   : > { %3139 = dma.done.wait (!%p2858_p11), %s2286_s27, 128  }
 0x9a6   : > { %3141 = vsyncadd (!%p2858_p11), %s2286_s27, 4294967168  ;;  %p27_p12 = scmp.ge.s32.totalorder %s3387_s25, 4   ;;  %s3813_s21 = smov %s3148_s22 }
 0x9a7   : > { %s3814_s22 = smov %s3152_s23  ;;  %s3815_s23 = smov %s3398_s19 }
 0x9a8   : > { %s3816_s24 = smov %s3387_s25  ;;  %29 = sbr.rel (!%p27_p12) target bundleno = 13 (0xd), region = 129 }
 0x9af   :  { %2291 = vsyncpa [#allocation3], 1 }
 0x9b0   :  { %2293 = vsyncpa [#allocation3 + $0x1], 1 }
 0x9b1   :  { %2294 = vsyncpa [#allocation6], 1 }
 0x9b2   :  { %2295 = vsyncpa [#allocation9], 1 }
 0x9b3   :  { %2296 = vsyncpa [#allocation4], 1 }
 0x9b4   :  { %2298 = vsyncpa [#allocation4 + $0x1], 1 }

</bundles_post_ra>
